<compile_context>
chip_gen: v7x
topology: tpu7x:2x2x1
jax: 0.10.0
libtpu: 0.0.40
codegen_flags: <defaults>
</compile_context>

<pallas_src>
import functools

import jax
import jax.numpy as jnp
from jax.experimental import pallas as pl
from jax.experimental.pallas import tpu as pltpu


# ----------------------------------------------------------------------------
# Fused kernel: one (batch, H-strip) step = expand -> dw3x3 -> project (+res)
# ----------------------------------------------------------------------------
def _inv_res_kernel(*refs, stride, strip_out, wq, rows_q, has_expand, use_res,
                    align):
    """Layouts:

      x_ref    : (1, S, S, Hq*Wq, cin)   zero-padded input split into S*S quadrants
                                         (spatial on sublanes, channels on lanes)
      mask_ref : (S, S, Hq*Wq, 1)        1.0 inside the image, 0.0 on the halo
                                         (only when has_expand)
      hid_ref  : (S*S, rows_q*Wq + 8, hidden)  VMEM scratch, never hits HBM
      xr_ref   : (1, cin, so*Wq)         channel-major residual strip (use_res)
      o_ref    : (1, oup, so*Wq)         channel-major output strip (lane-dense;
                                         last Wq-W_out cols of each row are junk)
    """
    idx = 0
    x_ref = refs[idx]; idx += 1
    if has_expand:
        mask_ref = refs[idx]; idx += 1
        we_ref = refs[idx]; idx += 1
        be_ref = refs[idx]; idx += 1
    else:
        mask_ref = we_ref = be_ref = None
    wdw_ref = refs[idx]; idx += 1
    bdw_ref = refs[idx]; idx += 1
    wpt_ref = refs[idx]; idx += 1
    bp_ref = refs[idx]; idx += 1
    if use_res:
        xr_ref = refs[idx]; idx += 1
    else:
        xr_ref = None
    o_ref = refs[idx]; idx += 1
    hid_ref = refs[idx]

    strip_idx = pl.program_id(1)
    S = stride
    so = strip_out
    hid_dim = hid_ref.shape[-1]
    strip_len = rows_q * wq
    tail = hid_ref.shape[1] - strip_len
    q_start = strip_idx * (so * wq)
    if align > 1:
        q_start = pl.multiple_of(q_start, align)

    # ---- expand 1x1 conv (+ folded BN + ReLU6) into VMEM, per quadrant. -------
    for rp in range(S):
        for cp in range(S):
            qi = rp * S + cp
            xs = x_ref[0, rp, cp, pl.ds(q_start, strip_len), :]   # (strip_len, cin)
            if has_expand:
                h = jnp.dot(xs.astype(we_ref.dtype), we_ref[...],
                            preferred_element_type=jnp.float32)
                h = jnp.clip(h + be_ref[...], 0.0, 6.0)
                # Emulate zero padding AFTER expand+BN+ReLU6 (halo is not zero
                # there because of the folded bias): multiply by 0/1 mask.
                m = mask_ref[rp, cp, pl.ds(q_start, strip_len), :]
                h = h * m
            else:
                # No expansion layer: the hidden tensor IS the zero-padded input.
                h = xs.astype(jnp.float32)
            hid_ref[qi, 0:strip_len, :] = h
            # Zero the small tail the shifted taps below may read past.
            hid_ref[qi, strip_len:, :] = jnp.zeros((tail, hid_dim), jnp.float32)

    # ---- depthwise 3x3 (+ folded BN + ReLU6): 9 shifted multiply-accumulates. -
    acc = None
    for dy in range(3):
        for dx in range(3):
            qi = (dy % S) * S + (dx % S)
            off = (dy // S) * wq + (dx // S)                      # static offset
            tap = hid_ref[qi, off:off + so * wq, :]
            k = dy * 3 + dx
            t = tap * wdw_ref[k:k + 1, :]
            acc = t if acc is None else acc + t
    acc = jnp.clip(acc + bdw_ref[...], 0.0, 6.0)                  # (so*Wq, hidden)

    # ---- project 1x1 conv (+ folded BN), computed channel-major directly. -----
    # y[o, s] = sum_h wpt[o, h] * acc[s, h]  -- q@k^T style contraction, native
    # MXU form; no materialized transpose.
    y = jax.lax.dot_general(
        wpt_ref[...], acc.astype(wpt_ref.dtype),
        dimension_numbers=(((1,), (1,)), ((), ())),
        preferred_element_type=jnp.float32)                       # (oup, so*Wq)
    y = y + bp_ref[...]
    if use_res:
        y = y + xr_ref[0].astype(jnp.float32)
    o_ref[0] = y.astype(o_ref.dtype)


# ----------------------------------------------------------------------------
# Strip selection: whole image unless the hidden scratch would blow VMEM.
# ----------------------------------------------------------------------------
def _pick_strip(h_out, wq, hidden, stride, budget=8 * 1024 * 1024):
    def scratch_bytes(so):
        rows_q = so + 2 // stride
        return stride * stride * (rows_q * wq + 8) * hidden * 4

    if scratch_bytes(h_out) <= budget:
        return h_out
    # Need H-strips: keep the channel-major output block 128-lane aligned.
    for so in range(h_out - 1, 0, -1):
        if h_out % so == 0 and (so * wq) % 128 == 0 and scratch_bytes(so) <= budget:
            return so
    # TODO(synk): very large images with no 128-aligned strip divisor fall back
    # to whole-image blocks and rely on the raised vmem limit.
    return h_out


# ----------------------------------------------------------------------------
# Wrapper (NCHW in / NCHW out, like the PyTorch module)
# ----------------------------------------------------------------------------
def inverted_residual_forward(x_nchw, params, *, stride, expand_ratio):
    assert stride in (1, 2)
    N, cin, H, W = x_nchw.shape
    if stride == 2:
        assert H % 2 == 0 and W % 2 == 0, "stride-2 path assumes even H, W"

    has_expand = expand_ratio != 1
    if has_expand:
        we, be = params["expand"]
        hidden = we.shape[1]
    else:
        we = be = None
        hidden = cin
    wdw3, bdw = params["dw"]
    wdw = wdw3.reshape(9, hidden)
    wp, bp = params["project"]
    oup = wp.shape[1]
    wpt = wp.T                                   # (oup, hidden) for channel-major out

    S = stride
    H_out, W_out = H // S, W // S
    Hq, Wq = (H + 2) // S, (W + 2) // S
    use_res = (stride == 1) and (cin == oup)

    so = _pick_strip(H_out, Wq, hidden, S)
    num_strips = H_out // so
    rows_q = so + 2 // S
    if num_strips == 1 or (so * Wq) % 128 == 0:
        align = 128
    elif (so * Wq) % 8 == 0:
        align = 8
    else:
        align = 1

    # NHWC for the expand-matmul layout; 1-px zero ring; S x S spatial
    # de-interleave of the SMALL pre-expansion tensor.
    x = jnp.transpose(x_nchw, (0, 2, 3, 1))
    xpad = jnp.pad(x, ((0, 0), (1, 1), (1, 1), (0, 0)))
    xq = xpad.reshape(N, Hq, S, Wq, S, cin).transpose(0, 2, 4, 1, 3, 5)
    xq = xq.reshape(N, S, S, Hq * Wq, cin)

    args = [xq]
    in_specs = [pl.BlockSpec((1, S, S, Hq * Wq, cin), lambda n, s: (n, 0, 0, 0, 0))]

    if has_expand:
        # 0/1 mask: hidden activations on the padding halo must be zero.
        ii = jnp.arange(Hq, dtype=jnp.int32)[:, None]
        jj = jnp.arange(Wq, dtype=jnp.int32)[None, :]
        quads = []
        for rp in range(S):
            rv = (S * ii + rp >= 1) & (S * ii + rp <= H)
            for cp in range(S):
                cv = (S * jj + cp >= 1) & (S * jj + cp <= W)
                quads.append((rv & cv).astype(jnp.float32).reshape(Hq * Wq, 1))
        mask = jnp.stack(quads).reshape(S, S, Hq * Wq, 1)
        args += [mask, we, be.reshape(1, hidden)]
        in_specs += [
            pl.BlockSpec((S, S, Hq * Wq, 1), lambda n, s: (0, 0, 0, 0)),
            pl.BlockSpec((cin, hidden), lambda n, s: (0, 0)),
            pl.BlockSpec((1, hidden), lambda n, s: (0, 0)),
        ]

    args += [wdw, bdw.reshape(1, hidden), wpt, bp.reshape(oup, 1)]
    in_specs += [
        pl.BlockSpec((9, hidden), lambda n, s: (0, 0)),
        pl.BlockSpec((1, hidden), lambda n, s: (0, 0)),
        pl.BlockSpec((oup, hidden), lambda n, s: (0, 0)),
        pl.BlockSpec((oup, 1), lambda n, s: (0, 0)),
    ]

    if use_res:
        # Channel-major residual strip: built from the NCHW input with just a
        # width pad + reshape (no transpose), flat row length Wq to match the
        # kernel's output layout.
        xr = jnp.pad(x_nchw, ((0, 0), (0, 0), (0, 0), (0, Wq - W)))
        xr = xr.reshape(N, cin, H_out * Wq)
        args.append(xr)
        in_specs.append(pl.BlockSpec((1, cin, so * Wq), lambda n, s: (n, 0, s)))

    kernel = functools.partial(
        _inv_res_kernel, stride=S, strip_out=so, wq=Wq, rows_q=rows_q,
        has_expand=has_expand, use_res=use_res, align=align)

    # VMEM budget: scratch + (double-buffered) input/output blocks + weights.
    itemsize = jnp.dtype(x_nchw.dtype).itemsize
    scratch_bytes = S * S * (rows_q * Wq + 8) * hidden * 4
    block_bytes = (
        S * S * Hq * Wq * cin * itemsize
        + (S * S * Hq * Wq * 4 if has_expand else 0)
        + (cin * hidden + hidden + 9 * hidden + hidden
           + oup * hidden + oup) * itemsize
        + (cin * so * Wq * itemsize if use_res else 0)
        + oup * so * Wq * itemsize)
    vmem_limit = int(min(100 * 1024 * 1024,
                         max(32 * 1024 * 1024,
                             2 * (scratch_bytes + 2 * block_bytes))))

    out_flat = pl.pallas_call(
        kernel,
        out_shape=jax.ShapeDtypeStruct((N, oup, H_out * Wq), x.dtype),
        grid=(N, num_strips),
        in_specs=in_specs,
        out_specs=pl.BlockSpec((1, oup, so * Wq), lambda n, s: (n, 0, s)),
        scratch_shapes=[pltpu.VMEM((S * S, rows_q * Wq + 8, hidden), jnp.float32)],
        compiler_params=pltpu.CompilerParams(
            dimension_semantics=("parallel", "parallel"),
            vmem_limit_bytes=vmem_limit,
        ),
    )(*args)

    # Drop the Wq - W_out junk columns per row; output is already NCHW-ordered.
    return out_flat.reshape(N, oup, H_out, Wq)[:, :, :, :W_out]


# ----------------------------------------------------------------------------
# Deterministic parameter init (BN folded into per-output-channel scale/bias)
# ----------------------------------------------------------------------------
def init_params(key, inp, oup, expand_ratio, dtype=jnp.float32):
    hidden = int(round(inp * expand_ratio))
    ks = jax.random.split(key, 6)
    eps = 1e-5

    def bn_fold(k, c):
        k1, k2, k3, k4 = jax.random.split(k, 4)
        gamma = jax.random.uniform(k1, (c,), dtype, 0.5, 1.5)
        beta = jax.random.uniform(k2, (c,), dtype, -0.5, 0.5)
        mean = jax.random.uniform(k3, (c,), dtype, -0.3, 0.3)
        var = jax.random.uniform(k4, (c,), dtype, 0.5, 1.5)
        scale = gamma / jnp.sqrt(var + eps)
        bias = beta - mean * scale
        return scale, bias

    params = {}
    if expand_ratio != 1:
        w = 0.2 * jax.random.normal(ks[0], (inp, hidden), dtype)
        s, b = bn_fold(ks[1], hidden)
        params["expand"] = (w * s[None, :], b)
    w = 0.2 * jax.random.normal(ks[2], (3, 3, hidden), dtype)
    s, b = bn_fold(ks[3], hidden)
    params["dw"] = (w * s[None, None, :], b)
    w = 0.2 * jax.random.normal(ks[4], (hidden, oup), dtype)
    s, b = bn_fold(ks[5], oup)
    params["project"] = (w * s[None, :], b)
    return params


# ----------------------------------------------------------------------------
# Pure-JAX reference (same folded parameters) for validation
# ----------------------------------------------------------------------------
def reference_forward(x_nchw, params, *, stride, expand_ratio):
    x = jnp.transpose(x_nchw, (0, 2, 3, 1))
    h = x
    if expand_ratio != 1:
        w, b = params["expand"]
        h = jnp.clip(jnp.einsum("nhwc,cd->nhwd", h, w) + b, 0.0, 6.0)
    w_dw, b_dw = params["dw"]
    C = h.shape[-1]
    h = jax.lax.conv_general_dilated(
        h, w_dw.reshape(3, 3, 1, C), (stride, stride), ((1, 1), (1, 1)),
        dimension_numbers=("NHWC", "HWIO", "NHWC"), feature_group_count=C)
    h = jnp.clip(h + b_dw, 0.0, 6.0)
    w_p, b_p = params["project"]
    h = jnp.einsum("nhwc,cd->nhwd", h, w_p) + b_p
    if stride == 1 and x.shape[-1] == w_p.shape[1]:
        h = h + x
    return jnp.transpose(h, (0, 3, 1, 2))


if __name__ == "__main__":
    key = jax.random.PRNGKey(0)
    configs = [
        # (inp, oup, stride, expand_ratio)
        (8, 8, 1, 4),    # expansion + residual path (stride 1, inp == oup)
        (8, 16, 2, 4),   # stride-2, computed in-kernel on the quadrant layout
        (8, 8, 1, 1),    # expand_ratio == 1 (no expansion layer) + residual
    ]
    for idx, (inp, oup, stride, er) in enumerate(configs):
        kx, kp, key = jax.random.split(key, 3)
        x = jax.random.normal(kx, (2, inp, 16, 16), jnp.float32)
        params = init_params(kp, inp, oup, er)

        out = inverted_residual_forward(x, params, stride=stride, expand_ratio=er)
        out = jax.block_until_ready(out)

        ref = reference_forward(x, params, stride=stride, expand_ratio=er)
        assert out.shape == ref.shape == (2, oup, 16 // stride, 16 // stride), (
            idx, out.shape, ref.shape)
        err = float(jnp.max(jnp.abs(out - ref)))
        assert jnp.allclose(out, ref, atol=1e-2, rtol=1e-2), (idx, err)

    # TODO(synk): BatchNorm is folded with inference-mode running stats;
    # training-mode batch statistics are not modeled.
    print("KERNEL_OK")
</pallas_src>

<mosaic_0001>
module attributes {stable_mosaic.version = 11 : i64} {
  func.func @_inv_res_kernel(%arg0: i32, %arg1: i32, %arg2: memref<1x1x1x324x8xf32, #tpu.memory_space<vmem>>, %arg3: memref<1x1x324x1xf32, #tpu.memory_space<vmem>>, %arg4: memref<8x32xf32, #tpu.memory_space<vmem>>, %arg5: memref<1x32xf32, #tpu.memory_space<vmem>>, %arg6: memref<9x32xf32, #tpu.memory_space<vmem>>, %arg7: memref<1x32xf32, #tpu.memory_space<vmem>>, %arg8: memref<8x32xf32, #tpu.memory_space<vmem>>, %arg9: memref<8x1xf32, #tpu.memory_space<vmem>>, %arg10: memref<1x8x288xf32, #tpu.memory_space<vmem>>, %arg11: memref<1x8x288xf32, #tpu.memory_space<vmem>>, %arg12: memref<1x332x32xf32, #tpu.memory_space<vmem>>) attributes {dimension_semantics = [#tpu.dimension_semantics<parallel>, #tpu.dimension_semantics<parallel>], iteration_bounds = array<i64: 2, 1>, scalar_prefetch = 0 : i64, scratch_operands = 1 : i64, tpu.core_type = #tpu.core_type<tc>, window_params = [{transform_indices = @transform_0, window_bounds = array<i64: 1, 1, 1, 324, 8>}, {pipeline_mode = #tpu.pipeline_mode<synchronous>, transform_indices = @transform_1, window_bounds = array<i64: 1, 1, 324, 1>}, {pipeline_mode = #tpu.pipeline_mode<synchronous>, transform_indices = @transform_2, window_bounds = array<i64: 8, 32>}, {pipeline_mode = #tpu.pipeline_mode<synchronous>, transform_indices = @transform_3, window_bounds = array<i64: 1, 32>}, {pipeline_mode = #tpu.pipeline_mode<synchronous>, transform_indices = @transform_4, window_bounds = array<i64: 9, 32>}, {pipeline_mode = #tpu.pipeline_mode<synchronous>, transform_indices = @transform_5, window_bounds = array<i64: 1, 32>}, {pipeline_mode = #tpu.pipeline_mode<synchronous>, transform_indices = @transform_6, window_bounds = array<i64: 8, 32>}, {pipeline_mode = #tpu.pipeline_mode<synchronous>, transform_indices = @transform_7, window_bounds = array<i64: 8, 1>}, {transform_indices = @transform_8, window_bounds = array<i64: 1, 8, 288>}, {transform_indices = @transform_9, window_bounds = array<i64: 1, 8, 288>}]} {
    %c288_i32 = arith.constant 288 : i32
    %0 = arith.muli %arg1, %c288_i32 : i32
    %1 = tpu.assume_multiple %0, 128 : i32
    %c0 = arith.constant 0 : index
    %c0_0 = arith.constant 0 : index
    %c0_1 = arith.constant 0 : index
    %2 = arith.index_cast %1 : i32 to index
    %c0_2 = arith.constant 0 : index
    %3 = vector.load %arg2[%c0, %c0_0, %c0_1, %2, %c0_2] : memref<1x1x1x324x8xf32, #tpu.memory_space<vmem>>, vector<1x1x1x324x8xf32>
    %4 = vector.shape_cast %3 : vector<1x1x1x324x8xf32> to vector<324x8xf32>
    %c0_3 = arith.constant 0 : index
    %c0_4 = arith.constant 0 : index
    %5 = vector.load %arg4[%c0_3, %c0_4] : memref<8x32xf32, #tpu.memory_space<vmem>>, vector<8x32xf32>
    %cst = arith.constant dense<0.000000e+00> : vector<324x32xf32>
    %6 = tpu.matmul %4, %5, %cst {dimension_numbers = #tpu.dot_dimension_numbers<[1], [0], [0], [1], [0, 0, 1, 1], [], []>} : vector<324x8xf32>, vector<8x32xf32>, vector<324x32xf32> -> vector<324x32xf32>
    %c0_5 = arith.constant 0 : index
    %c0_6 = arith.constant 0 : index
    %7 = vector.load %arg5[%c0_5, %c0_6] : memref<1x32xf32, #tpu.memory_space<vmem>>, vector<1x32xf32>
    %8 = vector.broadcast %7 : vector<1x32xf32> to vector<324x32xf32>
    %9 = arith.addf %6, %8 : vector<324x32xf32>
    %cst_7 = arith.constant 0.000000e+00 : f32
    %cst_8 = arith.constant 6.000000e+00 : f32
    %10 = vector.broadcast %cst_7 : f32 to vector<324x32xf32>
    %11 = arith.maximumf %10, %9 : vector<324x32xf32>
    %12 = vector.broadcast %cst_8 : f32 to vector<324x32xf32>
    %13 = arith.minimumf %12, %11 : vector<324x32xf32>
    %c0_9 = arith.constant 0 : index
    %c0_10 = arith.constant 0 : index
    %14 = arith.index_cast %1 : i32 to index
    %c0_11 = arith.constant 0 : index
    %15 = vector.load %arg3[%c0_9, %c0_10, %14, %c0_11] : memref<1x1x324x1xf32, #tpu.memory_space<vmem>>, vector<1x1x324x1xf32>
    %16 = vector.shape_cast %15 : vector<1x1x324x1xf32> to vector<324x1xf32>
    %17 = vector.broadcast %16 : vector<324x1xf32> to vector<324x32xf32>
    %18 = arith.mulf %13, %17 : vector<324x32xf32>
    %c0_12 = arith.constant 0 : index
    %c0_13 = arith.constant 0 : index
    %c0_14 = arith.constant 0 : index
    %19 = vector.load %arg12[%c0_12, %c0_13, %c0_14] : memref<1x332x32xf32, #tpu.memory_space<vmem>>, vector<1x324x32xf32>
    %20 = vector.shape_cast %19 : vector<1x324x32xf32> to vector<324x32xf32>
    %21 = vector.shape_cast %18 : vector<324x32xf32> to vector<1x324x32xf32>
    tpu.vector_store %arg12[%c0_12, %c0_13, %c0_14], %21 {strides = array<i32>} : memref<1x332x32xf32, #tpu.memory_space<vmem>>, vector<1x324x32xf32>,
    %cst_15 = arith.constant 0.000000e+00 : f32
    %22 = vector.broadcast %cst_15 : f32 to vector<8x32xf32>
    %c0_16 = arith.constant 0 : index
    %c324 = arith.constant 324 : index
    %c0_17 = arith.constant 0 : index
    %23 = vector.load %arg12[%c0_16, %c324, %c0_17] : memref<1x332x32xf32, #tpu.memory_space<vmem>>, vector<1x8x32xf32>
    %24 = vector.shape_cast %23 : vector<1x8x32xf32> to vector<8x32xf32>
    %25 = vector.shape_cast %22 : vector<8x32xf32> to vector<1x8x32xf32>
    tpu.vector_store %arg12[%c0_16, %c324, %c0_17], %25 {strides = array<i32>} : memref<1x332x32xf32, #tpu.memory_space<vmem>>, vector<1x8x32xf32>,
    %c0_18 = arith.constant 0 : index
    %c0_19 = arith.constant 0 : index
    %c0_20 = arith.constant 0 : index
    %26 = vector.load %arg12[%c0_18, %c0_19, %c0_20] : memref<1x332x32xf32, #tpu.memory_space<vmem>>, vector<1x288x32xf32>
    %27 = vector.shape_cast %26 : vector<1x288x32xf32> to vector<288x32xf32>
    %c0_21 = arith.constant 0 : index
    %c0_22 = arith.constant 0 : index
    %28 = vector.load %arg6[%c0_21, %c0_22] : memref<9x32xf32, #tpu.memory_space<vmem>>, vector<1x32xf32>
    %29 = vector.broadcast %28 : vector<1x32xf32> to vector<288x32xf32>
    %30 = arith.mulf %27, %29 : vector<288x32xf32>
    %c0_23 = arith.constant 0 : index
    %c1 = arith.constant 1 : index
    %c0_24 = arith.constant 0 : index
    %31 = vector.load %arg12[%c0_23, %c1, %c0_24] : memref<1x332x32xf32, #tpu.memory_space<vmem>>, vector<1x288x32xf32>
    %32 = vector.shape_cast %31 : vector<1x288x32xf32> to vector<288x32xf32>
    %c1_25 = arith.constant 1 : index
    %c0_26 = arith.constant 0 : index
    %33 = vector.load %arg6[%c1_25, %c0_26] : memref<9x32xf32, #tpu.memory_space<vmem>>, vector<1x32xf32>
    %34 = vector.broadcast %33 : vector<1x32xf32> to vector<288x32xf32>
    %35 = arith.mulf %32, %34 : vector<288x32xf32>
    %36 = arith.addf %30, %35 : vector<288x32xf32>
    %c0_27 = arith.constant 0 : index
    %c2 = arith.constant 2 : index
    %c0_28 = arith.constant 0 : index
    %37 = vector.load %arg12[%c0_27, %c2, %c0_28] : memref<1x332x32xf32, #tpu.memory_space<vmem>>, vector<1x288x32xf32>
    %38 = vector.shape_cast %37 : vector<1x288x32xf32> to vector<288x32xf32>
    %c2_29 = arith.constant 2 : index
    %c0_30 = arith.constant 0 : index
    %39 = vector.load %arg6[%c2_29, %c0_30] : memref<9x32xf32, #tpu.memory_space<vmem>>, vector<1x32xf32>
    %40 = vector.broadcast %39 : vector<1x32xf32> to vector<288x32xf32>
    %41 = arith.mulf %38, %40 : vector<288x32xf32>
    %42 = arith.addf %36, %41 : vector<288x32xf32>
    %c0_31 = arith.constant 0 : index
    %c18 = arith.constant 18 : index
    %c0_32 = arith.constant 0 : index
    %43 = vector.load %arg12[%c0_31, %c18, %c0_32] : memref<1x332x32xf32, #tpu.memory_space<vmem>>, vector<1x288x32xf32>
    %44 = vector.shape_cast %43 : vector<1x288x32xf32> to vector<288x32xf32>
    %c3 = arith.constant 3 : index
    %c0_33 = arith.constant 0 : index
    %45 = vector.load %arg6[%c3, %c0_33] : memref<9x32xf32, #tpu.memory_space<vmem>>, vector<1x32xf32>
    %46 = vector.broadcast %45 : vector<1x32xf32> to vector<288x32xf32>
    %47 = arith.mulf %44, %46 : vector<288x32xf32>
    %48 = arith.addf %42, %47 : vector<288x32xf32>
    %c0_34 = arith.constant 0 : index
    %c19 = arith.constant 19 : index
    %c0_35 = arith.constant 0 : index
    %49 = vector.load %arg12[%c0_34, %c19, %c0_35] : memref<1x332x32xf32, #tpu.memory_space<vmem>>, vector<1x288x32xf32>
    %50 = vector.shape_cast %49 : vector<1x288x32xf32> to vector<288x32xf32>
    %c4 = arith.constant 4 : index
    %c0_36 = arith.constant 0 : index
    %51 = vector.load %arg6[%c4, %c0_36] : memref<9x32xf32, #tpu.memory_space<vmem>>, vector<1x32xf32>
    %52 = vector.broadcast %51 : vector<1x32xf32> to vector<288x32xf32>
    %53 = arith.mulf %50, %52 : vector<288x32xf32>
    %54 = arith.addf %48, %53 : vector<288x32xf32>
    %c0_37 = arith.constant 0 : index
    %c20 = arith.constant 20 : index
    %c0_38 = arith.constant 0 : index
    %55 = vector.load %arg12[%c0_37, %c20, %c0_38] : memref<1x332x32xf32, #tpu.memory_space<vmem>>, vector<1x288x32xf32>
    %56 = vector.shape_cast %55 : vector<1x288x32xf32> to vector<288x32xf32>
    %c5 = arith.constant 5 : index
    %c0_39 = arith.constant 0 : index
    %57 = vector.load %arg6[%c5, %c0_39] : memref<9x32xf32, #tpu.memory_space<vmem>>, vector<1x32xf32>
    %58 = vector.broadcast %57 : vector<1x32xf32> to vector<288x32xf32>
    %59 = arith.mulf %56, %58 : vector<288x32xf32>
    %60 = arith.addf %54, %59 : vector<288x32xf32>
    %c0_40 = arith.constant 0 : index
    %c36 = arith.constant 36 : index
    %c0_41 = arith.constant 0 : index
    %61 = vector.load %arg12[%c0_40, %c36, %c0_41] : memref<1x332x32xf32, #tpu.memory_space<vmem>>, vector<1x288x32xf32>
    %62 = vector.shape_cast %61 : vector<1x288x32xf32> to vector<288x32xf32>
    %c6 = arith.constant 6 : index
    %c0_42 = arith.constant 0 : index
    %63 = vector.load %arg6[%c6, %c0_42] : memref<9x32xf32, #tpu.memory_space<vmem>>, vector<1x32xf32>
    %64 = vector.broadcast %63 : vector<1x32xf32> to vector<288x32xf32>
    %65 = arith.mulf %62, %64 : vector<288x32xf32>
    %66 = arith.addf %60, %65 : vector<288x32xf32>
    %c0_43 = arith.constant 0 : index
    %c37 = arith.constant 37 : index
    %c0_44 = arith.constant 0 : index
    %67 = vector.load %arg12[%c0_43, %c37, %c0_44] : memref<1x332x32xf32, #tpu.memory_space<vmem>>, vector<1x288x32xf32>
    %68 = vector.shape_cast %67 : vector<1x288x32xf32> to vector<288x32xf32>
    %c7 = arith.constant 7 : index
    %c0_45 = arith.constant 0 : index
    %69 = vector.load %arg6[%c7, %c0_45] : memref<9x32xf32, #tpu.memory_space<vmem>>, vector<1x32xf32>
    %70 = vector.broadcast %69 : vector<1x32xf32> to vector<288x32xf32>
    %71 = arith.mulf %68, %70 : vector<288x32xf32>
    %72 = arith.addf %66, %71 : vector<288x32xf32>
    %c0_46 = arith.constant 0 : index
    %c38 = arith.constant 38 : index
    %c0_47 = arith.constant 0 : index
    %73 = vector.load %arg12[%c0_46, %c38, %c0_47] : memref<1x332x32xf32, #tpu.memory_space<vmem>>, vector<1x288x32xf32>
    %74 = vector.shape_cast %73 : vector<1x288x32xf32> to vector<288x32xf32>
    %c8 = arith.constant 8 : index
    %c0_48 = arith.constant 0 : index
    %75 = vector.load %arg6[%c8, %c0_48] : memref<9x32xf32, #tpu.memory_space<vmem>>, vector<1x32xf32>
    %76 = vector.broadcast %75 : vector<1x32xf32> to vector<288x32xf32>
    %77 = arith.mulf %74, %76 : vector<288x32xf32>
    %78 = arith.addf %72, %77 : vector<288x32xf32>
    %c0_49 = arith.constant 0 : index
    %c0_50 = arith.constant 0 : index
    %79 = vector.load %arg7[%c0_49, %c0_50] : memref<1x32xf32, #tpu.memory_space<vmem>>, vector<1x32xf32>
    %80 = vector.broadcast %79 : vector<1x32xf32> to vector<288x32xf32>
    %81 = arith.addf %78, %80 : vector<288x32xf32>
    %cst_51 = arith.constant 0.000000e+00 : f32
    %cst_52 = arith.constant 6.000000e+00 : f32
    %82 = vector.broadcast %cst_51 : f32 to vector<288x32xf32>
    %83 = arith.maximumf %82, %81 : vector<288x32xf32>
    %84 = vector.broadcast %cst_52 : f32 to vector<288x32xf32>
    %85 = arith.minimumf %84, %83 : vector<288x32xf32>
    %c0_53 = arith.constant 0 : index
    %c0_54 = arith.constant 0 : index
    %86 = vector.load %arg8[%c0_53, %c0_54] : memref<8x32xf32, #tpu.memory_space<vmem>>, vector<8x32xf32>
    %cst_55 = arith.constant dense<0.000000e+00> : vector<8x288xf32>
    %87 = tpu.matmul %86, %85, %cst_55 {dimension_numbers = #tpu.dot_dimension_numbers<[1], [1], [0], [0], [0, 0, 1, 0], [], []>} : vector<8x32xf32>, vector<288x32xf32>, vector<8x288xf32> -> vector<8x288xf32>
    %c0_56 = arith.constant 0 : index
    %c0_57 = arith.constant 0 : index
    %88 = vector.load %arg9[%c0_56, %c0_57] : memref<8x1xf32, #tpu.memory_space<vmem>>, vector<8x1xf32>
    %89 = vector.broadcast %88 : vector<8x1xf32> to vector<8x288xf32>
    %90 = arith.addf %87, %89 : vector<8x288xf32>
    %c0_58 = arith.constant 0 : index
    %c0_59 = arith.constant 0 : index
    %c0_60 = arith.constant 0 : index
    %91 = vector.load %arg10[%c0_58, %c0_59, %c0_60] : memref<1x8x288xf32, #tpu.memory_space<vmem>>, vector<1x8x288xf32>
    %92 = vector.shape_cast %91 : vector<1x8x288xf32> to vector<8x288xf32>
    %93 = arith.addf %90, %92 : vector<8x288xf32>
    %c0_61 = arith.constant 0 : index
    %c0_62 = arith.constant 0 : index
    %c0_63 = arith.constant 0 : index
    %94 = vector.load %arg11[%c0_61, %c0_62, %c0_63] : memref<1x8x288xf32, #tpu.memory_space<vmem>>, vector<1x8x288xf32>
    %95 = vector.shape_cast %94 : vector<1x8x288xf32> to vector<8x288xf32>
    %96 = vector.shape_cast %93 : vector<8x288xf32> to vector<1x8x288xf32>
    tpu.vector_store %arg11[%c0_61, %c0_62, %c0_63], %96 {strides = array<i32>} : memref<1x8x288xf32, #tpu.memory_space<vmem>>, vector<1x8x288xf32>,
    return
  }
  func.func @transform_0(%arg0: i32, %arg1: i32) -> (i32, i32, i32, i32, i32) {
    %c0_i32 = arith.constant 0 : i32
    %c0_i32_0 = arith.constant 0 : i32
    %c0_i32_1 = arith.constant 0 : i32
    %c0_i32_2 = arith.constant 0 : i32
    %c0_i32_3 = arith.constant 0 : i32
    return %arg0, %c0_i32, %c0_i32_0, %c0_i32_1, %c0_i32_2 : i32, i32, i32, i32, i32
  }
  func.func @transform_1(%arg0: i32, %arg1: i32) -> (i32, i32, i32, i32) {
    %c0_i32 = arith.constant 0 : i32
    %c0_i32_0 = arith.constant 0 : i32
    %c0_i32_1 = arith.constant 0 : i32
    %c0_i32_2 = arith.constant 0 : i32
    %c0_i32_3 = arith.constant 0 : i32
    return %c0_i32, %c0_i32_0, %c0_i32_1, %c0_i32_2 : i32, i32, i32, i32
  }
  func.func @transform_2(%arg0: i32, %arg1: i32) -> (i32, i32) {
    %c0_i32 = arith.constant 0 : i32
    %c0_i32_0 = arith.constant 0 : i32
    %c0_i32_1 = arith.constant 0 : i32
    return %c0_i32, %c0_i32_0 : i32, i32
  }
  func.func @transform_3(%arg0: i32, %arg1: i32) -> (i32, i32) {
    %c0_i32 = arith.constant 0 : i32
    %c0_i32_0 = arith.constant 0 : i32
    %c0_i32_1 = arith.constant 0 : i32
    return %c0_i32, %c0_i32_0 : i32, i32
  }
  func.func @transform_4(%arg0: i32, %arg1: i32) -> (i32, i32) {
    %c0_i32 = arith.constant 0 : i32
    %c0_i32_0 = arith.constant 0 : i32
    %c0_i32_1 = arith.constant 0 : i32
    return %c0_i32, %c0_i32_0 : i32, i32
  }
  func.func @transform_5(%arg0: i32, %arg1: i32) -> (i32, i32) {
    %c0_i32 = arith.constant 0 : i32
    %c0_i32_0 = arith.constant 0 : i32
    %c0_i32_1 = arith.constant 0 : i32
    return %c0_i32, %c0_i32_0 : i32, i32
  }
  func.func @transform_6(%arg0: i32, %arg1: i32) -> (i32, i32) {
    %c0_i32 = arith.constant 0 : i32
    %c0_i32_0 = arith.constant 0 : i32
    %c0_i32_1 = arith.constant 0 : i32
    return %c0_i32, %c0_i32_0 : i32, i32
  }
  func.func @transform_7(%arg0: i32, %arg1: i32) -> (i32, i32) {
    %c0_i32 = arith.constant 0 : i32
    %c0_i32_0 = arith.constant 0 : i32
    %c0_i32_1 = arith.constant 0 : i32
    return %c0_i32, %c0_i32_0 : i32, i32
  }
  func.func @transform_8(%arg0: i32, %arg1: i32) -> (i32, i32, i32) {
    %c0_i32 = arith.constant 0 : i32
    %c0_i32_0 = arith.constant 0 : i32
    return %arg0, %c0_i32, %arg1 : i32, i32, i32
  }
  func.func @transform_9(%arg0: i32, %arg1: i32) -> (i32, i32, i32) {
    %c0_i32 = arith.constant 0 : i32
    %c0_i32_0 = arith.constant 0 : i32
    return %arg0, %c0_i32, %arg1 : i32, i32, i32
  }
}

</mosaic_0001>

<bundles_post_ra>
// kernel: tpu_custom_call.1
= control target key start
LH: loop header
LB: loop body
LE: loop exit
PB: predicated region body
PF: predicated region fallthrough
CT: control target
= control target key end

     0   :  { %14 = vsyncpa [#allocation4], 0  ;;  %s4729_s0 = inlined_call_operand.vmem [shape: f32[2,1,1,324,8], index: 0, kind: input, shape index: {}]   ;;  %s4730_s1 = inlined_call_operand.vmem [shape: f32[1,1,324,1], index: 1, kind: input, shape index: {}]   ;;  %s4731_s2 = inlined_call_operand.vmem [shape: f32[8,32], index: 2, kind: input, shape index: {}]   ;;  %s4732_s3 = inlined_call_operand.vmem [shape: f32[1,32], index: 3, kind: input, shape index: {}]   ;;  %s4733_s4 = inlined_call_operand.vmem [shape: f32[9,32], index: 4, kind: input, shape index: {}]   ;;  %s4734_s5 = inlined_call_operand.vmem [shape: f32[1,32], index: 5, kind: input, shape index: {}]   ;;  %s4735_s6 = inlined_call_operand.vmem [shape: f32[8,32], index: 6, kind: input, shape index: {}]   ;;  %s4736_s7 = inlined_call_operand.vmem [shape: f32[8,1], index: 7, kind: input, shape index: {}]   ;;  %s4737_s8 = inlined_call_operand.vmem [shape: f32[2,8,288], index: 8, kind: input, shape index: {}]   ;;  %s4738_s9 = inlined_call_operand.hbm [shape: f32[2,8,288], index: 9, kind: output, shape index: {}]  }
   0x1   :  { %16 = vsyncpa [#allocation4 + $0x1], 0  ;;  %s3246_s30 = smov 0   ;;  %s3248_s10 = smov 0  }
   0x2   :  { %s3250_s11 = smov 0   ;;  %s3252_s12 = smov 0  }
   0x3   :  { %s3254_s13 = smov 0   ;;  %s3256_s14 = smov 0  }
   0x4 LB: > { %s2646_s15 = sadd.s32 4294967295, %s3189_s14   ;;  %s2647_s16 = sadd.s32 4294967294, %s3189_s14   ;;  %s3189_s14 = sphi %s3256_s14, %s22_s14   ;;  %s3185_s13 = sphi %s3254_s13, %s4796_s13   ;;  %s3181_s12 = sphi %s3252_s12, %s4795_s12   ;;  %s3177_s11 = sphi %s3250_s11, %s4794_s11   ;;  %s3173_s10 = sphi %s3248_s10, %s4793_s10   ;;  %s3169_s30 = sphi %s3246_s30, %s4792_s30  }
   0x5   : > { %s34_s17 = sadd.s32 1, %s3185_s13  ;;  %s244_s18 = sadd.s32 1, %s3177_s11 }
   0x6   : > { %p36_p0 = scmp.ge.s32.totalorder %s34_s17, 2  ;;  %p254_p1 = scmp.ne.s32.totalorder %s3177_s11, %s3173_s10 }
   0x7   : > { %p255_p2 = scmp.eq.s32.totalorder %s2646_s15, 1  ;;  %p260_p3 = scmp.ne.s32.totalorder %s3173_s10, %s3169_s30 }
   0x8   : > { %s4798_s17 = smov (%p36_p0, %s34_s17), 0  ;;  %p261_p5 = scmp.eq.s32.totalorder %s2647_s16, 1 }
   0x9   : > { %p3286_p4 = por %p255_p2, %p254_p1  ;;  %s239_s20 = ssub.s32 %s3185_s13, %s4798_s17 }
   0xa   : > { %p2650_p6 = scmp.ge.s32.totalorder %s3189_s14, 1  ;;  %p242_p7 = scmp.eq.s32.totalorder %s239_s20, 0 }
   0xb   : > { %p3293_p8 = por %p261_p5, %p260_p3  ;;  %p321_p9 = scmp.lt.s32.totalorder %s3189_s14, 3 }
   0xc   : > { %s3299_s22 = scalar_select %p242_p7, %s3177_s11, %s244_s18  }
   0xd   : > { %p322_p10 = pnand %p2650_p6, %p321_p9 }
   0xf   : > { %325 = sbr.rel (%p322_p10) target bundleno = 734 (0x2de), region = 56 }
  0x16   : > { %v425_v0 = vld [vmem:[%s4731_s2] sm:$0xff]  ;;  %p366_p11 = scmp.lt.s32.totalorder %s3181_s12, 1  ;;  %v4739_v1 = vmov 0.0   ;;  %v928_v3 = vld [vmem:[%s4730_s1 + $0x90] sm:$0xff]  ;;  %vm3192_vm0 = vmmov 0   ;;  %v3193_v4 = vmov 0  }
  0x17   : > { %2827 = vmatprep.subr.mxu0 %v4739_v1  ;;  %3019 = vmatprep.subr.mxu1 %v4739_v1  ;;  %v926_v2 = vld [vmem:[%s4730_s1 + $0x80] sm:$0xff]  ;;  %vm433_vm1 = vcmask 64512   ;;  %v927_v5 = vld [vmem:[%s4730_s1 + $0x88] sm:$0xff]  ;;  %v912_v12 = vld [vmem:[%s4730_s1 + $0x10] sm:$0xff]  ;;  %vm1197_vm2 = vcmask 261120   ;;  %vm1238_vm3 = vcmask 257024  }
  0x18   : > { %2828 = vmatpush3.msra.mxu0 %v425_v0  ;;  %3020 = vmatpush3.msra.mxu1 %v425_v0  ;;  %s3308_s25 = scalar_select %p366_p11, %s3181_s12, 1  ;;  %v910_v8 = vld [vmem:[%s4730_s1] sm:$0xff]  ;;  %v911_v11 = vld [vmem:[%s4730_s1 + $0x8] sm:$0xff]  ;;  %v929_v15 = vld [vmem:[%s4730_s1 + $0x98] sm:$0xff]  ;;  %1240 = vst.msk [vmem:[#allocation2 + $0x144] sm:$0xff] %vm1197_vm2, %v4739_v1 }
  0x19   : > { %2829 = vmatprep.mubr.msk.f32.mxu0 %vm3192_vm0, %v4739_v1  ;;  %2898 = vmatprep.mubr.msk.f32.mxu1 %vm3192_vm0, %v4739_v1  ;;  %v930_v16 = vld [vmem:[%s4730_s1 + $0xa0] sm:$0xff]  ;;  %v913_v19 = vld [vmem:[%s4730_s1 + $0x18] sm:$0xff]  ;;  %v931_v23 = vld [vmem:[%s4730_s1 + $0xa8] sm:$0xff]  ;;  %s363_s29 = sand.u32 1, %s3173_s10   ;;  %s3195_s16 = smov [#allocation3]  }
  0x1a   : > { %s3022_s15 = smul.u32 328, %s3308_s25  ;;  %3084 = vset.pattern.permute.xlu0 %v3193_v4  ;;  %3085 = vset.pattern.permute.xlu1 %v3193_v4  ;;  %v914_v20 = vld [vmem:[%s4730_s1 + $0x20] sm:$0xff]  ;;  %v932_v24 = vld [vmem:[%s4730_s1 + $0xb0] sm:$0xff]  ;;  %v915_v27 = vld [vmem:[%s4730_s1 + $0x28] sm:$0xff] }
  0x1b   : > { %1033 = vperm.xlu0 %3084, %v926_v2   ;;  %1043 = vperm.xlu1 %3085, %v928_v3   ;;  %v916_v28 = vld [vmem:[%s4730_s1 + $0x30] sm:$0xff]  ;;  %v933_v31 = vld [vmem:[%s4730_s1 + $0xb8] sm:$0xff]  ;;  %v934_v32 = vld [vmem:[%s4730_s1 + $0xc0] sm:$0xff]  ;;  %s3023_s28 = smul.u32 24, %s3308_s25 }
  0x1c   : > { %s3324_s20 = scalar_lea.vmem %s4729_s0, %s3022_s15  ;;  %v917_v35 = vld [vmem:[%s4730_s1 + $0x38] sm:$0xff]  ;;  %v918_v36 = vld [vmem:[%s4730_s1 + $0x40] sm:$0xff]  ;;  %v935_v39 = vld [vmem:[%s4730_s1 + $0xc8] sm:$0xff]  ;;  %s3021_s18 = smul.u32 24, %s363_s29 }
  0x1d   : > { %v384_v6 = vld [vmem:[%s3324_s20] sm:$0xff]  ;;  %v407_v7 = vld [vmem:[%s3324_s20 + $0xb8] sm:$0xff]  ;;  %v385_v9 = vld [vmem:[%s3324_s20 + $0x8] sm:$0xff]  ;;  %s3024_s25 = smul.u32 384, %s3181_s12  ;;  %s2538_s15 = scalar_lea.sflag [#allocation4], %s363_s29 }
  0x1e   : > { %2830 = vmatmul.mubr.msk.f32.vlgmr.msra.gmra.mrb[0].mxu0 %vm433_vm1, %v384_v6  ;;  %2899 = vmatmul.mubr.msk.f32.vlgmr.msra.gmra.mrb[0].mxu1 %vm433_vm1, %v407_v7  ;;  %v408_v10 = vld [vmem:[%s3324_s20 + $0xc0] sm:$0xff]  ;;  %v386_v13 = vld [vmem:[%s3324_s20 + $0x10] sm:$0xff]  ;;  %v409_v14 = vld [vmem:[%s3324_s20 + $0xc8] sm:$0xff]  ;;  %s365_s23 = scalar_lea.vmem [#allocation3], %s3021_s18 }
  0x1f   : > { %2832 = vmatprep.mubr.msk.f32.mxu0 %vm3192_vm0, %v4739_v1  ;;  %2901 = vmatprep.mubr.msk.f32.mxu1 %vm3192_vm0, %v4739_v1  ;;  %v387_v17 = vld [vmem:[%s3324_s20 + $0x18] sm:$0xff]  ;;  %v410_v18 = vld [vmem:[%s3324_s20 + $0xd0] sm:$0xff]  ;;  %v388_v21 = vld [vmem:[%s3324_s20 + $0x20] sm:$0xff]  ;;  %s2554_s24 = sshll.u32 %s365_s23, 4  ;;  %s4683_s24 = int_to_ptr.vmem [resolvable:$true] %s2554_s24 }
  0x20   : > { %1038 = vperm.xlu0 %3084, %v927_v5   ;;  %953 = vperm.xlu1 %3085, %v910_v8   ;;  %v411_v22 = vld [vmem:[%s3324_s20 + $0xd8] sm:$0xff]  ;;  %v389_v25 = vld [vmem:[%s3324_s20 + $0x28] sm:$0xff]  ;;  %v412_v26 = vld [vmem:[%s3324_s20 + $0xe0] sm:$0xff]  ;;  %s3111_s12 = scalar_lea.vmem %s4683_s24, 384 }
  0x21   : > { %v390_v29 = vld [vmem:[%s3324_s20 + $0x30] sm:$0xff]  ;;  %v413_v30 = vld [vmem:[%s3324_s20 + $0xe8] sm:$0xff]  ;;  %v391_v33 = vld [vmem:[%s3324_s20 + $0x38] sm:$0xff]  ;;  %p3112_p12 = scmp.ne.s32.totalorder %s4683_s24, %s3111_s12 }
  0x22   : > { %2833 = vmatmul.mubr.msk.f32.gmra.mrb[2].mxu0 %vm433_vm1, %v385_v9  ;;  %2902 = vmatmul.mubr.msk.f32.gmra.mrb[2].mxu1 %vm433_vm1, %v408_v10  ;;  %v414_v34 = vld [vmem:[%s3324_s20 + $0xf0] sm:$0xff]  ;;  %v392_v37 = vld [vmem:[%s3324_s20 + $0x40] sm:$0xff]  ;;  %v415_v38 = vld [vmem:[%s3324_s20 + $0xf8] sm:$0xff] }
  0x23   : > { %2835 = vmatprep.mubr.msk.f32.mxu0 %vm3192_vm0, %v4739_v1  ;;  %2904 = vmatprep.mubr.msk.f32.mxu1 %vm3192_vm0, %v4739_v1  ;;  %v936_v40 = vld [vmem:[%s4730_s1 + $0xd0] sm:$0xff]  ;;  %v393_v41 = vld [vmem:[%s3324_s20 + $0x48] sm:$0xff]  ;;  %v416_v42 = vld [vmem:[%s3324_s20 + $0x100] sm:$0xff]  ;;  %p3113_p13 = pnand %p3112_p12, %p3286_p4 }
  0x24   : > { %958 = vperm.xlu0 %3084, %v911_v11   ;;  %963 = vperm.xlu1 %3085, %v912_v12   ;;  %v919_v43 = vld [vmem:[%s4730_s1 + $0x48] sm:$0xff]  ;;  %v920_v44 = vld [vmem:[%s4730_s1 + $0x50] sm:$0xff]  ;;  %v937_v47 = vld [vmem:[%s4730_s1 + $0xd8] sm:$0xff] }
  0x25   : > { %v394_v45 = vld [vmem:[%s3324_s20 + $0x50] sm:$0xff]  ;;  %v417_v46 = vld [vmem:[%s3324_s20 + $0x108] sm:$0xff]  ;;  %v938_v48 = vld [vmem:[%s4730_s1 + $0xe0] sm:$0xff]  ;;  %p3114_p0 = pneg %p3113_p13 }
  0x26   : > { %2836 = vmatmul.mubr.msk.f32.gmra.mrb[4].mxu0 %vm433_vm1, %v386_v13  ;;  %2905 = vmatmul.mubr.msk.f32.gmra.mrb[4].mxu1 %vm433_vm1, %v409_v14  ;;  %v395_v49 = vld [vmem:[%s3324_s20 + $0x58] sm:$0xff]  ;;  %v418_v50 = vld [vmem:[%s3324_s20 + $0x110] sm:$0xff]  ;;  %v922_v52 = vld [vmem:[%s4730_s1 + $0x60] sm:$0xff] }
  0x27   : > { %2838 = vmatprep.mubr.msk.f32.mxu0 %vm3192_vm0, %v4739_v1  ;;  %2907 = vmatprep.mubr.msk.f32.mxu1 %vm3192_vm0, %v4739_v1  ;;  %v921_v51 = vld [vmem:[%s4730_s1 + $0x58] sm:$0xff]  ;;  %v396_v53 = vld [vmem:[%s3324_s20 + $0x60] sm:$0xff]  ;;  %v939_v55 = vld [vmem:[%s4730_s1 + $0xe8] sm:$0xff] }
  0x28   : > { %1048 = vperm.xlu0 %3084, %v929_v15   ;;  %1053 = vperm.xlu1 %3085, %v930_v16   ;;  %v419_v54 = vld [vmem:[%s3324_s20 + $0x118] sm:$0xff]  ;;  %v940_v56 = vld [vmem:[%s4730_s1 + $0xf0] sm:$0xff]  ;;  %v397_v57 = vld [vmem:[%s3324_s20 + $0x68] sm:$0xff] }
  0x29   : > { %v420_v58 = vld [vmem:[%s3324_s20 + $0x120] sm:$0xff]  ;;  %v923_v59 = vld [vmem:[%s4730_s1 + $0x68] sm:$0xff]  ;;  %v924_v60 = vld [vmem:[%s4730_s1 + $0x70] sm:$0xff] }
  0x2a   : > { %2839 = vmatmul.mubr.msk.f32.gmra.mrb[6].mxu0 %vm433_vm1, %v387_v17  ;;  %2908 = vmatmul.mubr.msk.f32.gmra.mrb[6].mxu1 %vm433_vm1, %v410_v18  ;;  %v398_v61 = vld [vmem:[%s3324_s20 + $0x70] sm:$0xff]  ;;  %v421_v62 = vld [vmem:[%s3324_s20 + $0x128] sm:$0xff]  ;;  %v941_v63 = vld [vmem:[%s4730_s1 + $0xf8] sm:$0xff] }
  0x2b   : > { %2841 = vmatprep.mubr.msk.f32.mxu0 %vm3192_vm0, %v4739_v1  ;;  %2910 = vmatprep.mubr.msk.f32.mxu1 %vm3192_vm0, %v4739_v1  ;;  %v942_v0 = vld [vmem:[%s4730_s1 + $0x100] sm:$0xff]  ;;  %v399_v2 = vld [vmem:[%s3324_s20 + $0x78] sm:$0xff]  ;;  %v422_v3 = vld [vmem:[%s3324_s20 + $0x130] sm:$0xff] }
  0x2c   : > { %968 = vperm.xlu0 %3084, %v913_v19   ;;  %973 = vperm.xlu1 %3085, %v914_v20   ;;  %v925_v4 = vld [vmem:[%s4730_s1 + $0x78] sm:$0xff]  ;;  %v943_v5 = vld [vmem:[%s4730_s1 + $0x108] sm:$0xff]  ;;  %v400_v6 = vld [vmem:[%s3324_s20 + $0x80] sm:$0xff] }
  0x2d   : > { %v423_v7 = vld [vmem:[%s3324_s20 + $0x138] sm:$0xff]  ;;  %v944_v8 = vld [vmem:[%s4730_s1 + $0x110] sm:$0xff]  ;;  %v401_v10 = vld [vmem:[%s3324_s20 + $0x88] sm:$0xff] }
  0x2e   : > { %2842 = vmatmul.mubr.msk.f32.gmra.mrb[8].mxu0 %vm433_vm1, %v388_v21  ;;  %2911 = vmatmul.mubr.msk.f32.gmra.mrb[8].mxu1 %vm433_vm1, %v411_v22  ;;  %v945_v9 = vld [vmem:[%s4730_s1 + $0x118] sm:$0xff]  ;;  %v424_v11 = vld [vmem:[%s3324_s20 + $0x140] sm:$0xf]  ;;  %v947_v13 = vld [vmem:[%s4730_s1 + $0x128] sm:$0xff] }
  0x2f   : > { %2844 = vmatprep.mubr.msk.f32.mxu0 %vm3192_vm0, %v4739_v1  ;;  %2913 = vmatprep.mubr.msk.f32.mxu1 %vm3192_vm0, %v4739_v1  ;;  %v946_v12 = vld [vmem:[%s4730_s1 + $0x120] sm:$0xff]  ;;  %v402_v14 = vld [vmem:[%s3324_s20 + $0x90] sm:$0xff]  ;;  %v949_v16 = vld [vmem:[%s4730_s1 + $0x138] sm:$0xff] }
  0x30   : > { %1058 = vperm.xlu0 %3084, %v931_v23   ;;  %1063 = vperm.xlu1 %3085, %v932_v24   ;;  %v948_v15 = vld [vmem:[%s4730_s1 + $0x130] sm:$0xff]  ;;  %v403_v17 = vld [vmem:[%s3324_s20 + $0x98] sm:$0xff]  ;;  %v950_v18 = vld [vmem:[%s4730_s1 + $0x140] sm:$0xf] }
  0x31   : > { %v2270_v19 = vld [vmem:[%s4736_s7] sm:$0xff]  ;;  %v405_v21 = vld [vmem:[%s3324_s20 + $0xa8] sm:$0xff]  ;;  %v406_v22 = vld [vmem:[%s3324_s20 + $0xb0] sm:$0xff] }
  0x32   : > { %2845 = vmatmul.mubr.msk.f32.gmra.mrb[10].mxu0 %vm433_vm1, %v389_v25  ;;  %2914 = vmatmul.mubr.msk.f32.gmra.mrb[10].mxu1 %vm433_vm1, %v412_v26  ;;  %v404_v20 = vld [vmem:[%s3324_s20 + $0xa0] sm:$0xff]  ;;  %vm4174_vm4 = vmpackc.low %vm1197_vm2, %vm1197_vm2  ;;  %s379_s20 = scalar_lea.vmem %s4737_s8, %s3023_s28  ;;  %s4681_s28 = scalar_lea.hbm %s4738_s9, %s3024_s25 }
  0x33   : > { %2847 = vmatprep.mubr.msk.f32.mxu0 %vm3192_vm0, %v4739_v1  ;;  %2916 = vmatprep.mubr.msk.f32.mxu1 %vm3192_vm0, %v4739_v1 }
  0x34   : > { %978 = vperm.xlu0 %3084, %v915_v27   ;;  %983 = vperm.xlu1 %3085, %v916_v28  }
  0x36   : > { %2848 = vmatmul.mubr.msk.f32.gmra.mrb[12].mxu0 %vm433_vm1, %v390_v29  ;;  %2917 = vmatmul.mubr.msk.f32.gmra.mrb[12].mxu1 %vm433_vm1, %v413_v30 }
  0x37   : > { %2850 = vmatprep.mubr.msk.f32.mxu0 %vm3192_vm0, %v4739_v1  ;;  %2919 = vmatprep.mubr.msk.f32.mxu1 %vm3192_vm0, %v4739_v1 }
  0x38   : > { %1068 = vperm.xlu0 %3084, %v933_v31   ;;  %1073 = vperm.xlu1 %3085, %v934_v32  }
  0x3a   : > { %2851 = vmatmul.mubr.msk.f32.gmra.mrb[14].mxu0 %vm433_vm1, %v391_v33  ;;  %2920 = vmatmul.mubr.msk.f32.gmra.mrb[14].mxu1 %vm433_vm1, %v414_v34 }
  0x3b   : > { %2853 = vmatprep.mubr.msk.f32.mxu0 %vm3192_vm0, %v4739_v1  ;;  %2922 = vmatprep.mubr.msk.f32.mxu1 %vm3192_vm0, %v4739_v1 }
  0x3c   : > { %988 = vperm.xlu0 %3084, %v917_v35   ;;  %993 = vperm.xlu1 %3085, %v918_v36  }
  0x3e   : > { %2854 = vmatmul.mubr.msk.f32.gmra.mrb[16].mxu0 %vm433_vm1, %v392_v37  ;;  %2923 = vmatmul.mubr.msk.f32.gmra.mrb[16].mxu1 %vm433_vm1, %v415_v38 }
  0x3f   : > { %2856 = vmatprep.mubr.msk.f32.mxu0 %vm3192_vm0, %v4739_v1  ;;  %2925 = vmatprep.mubr.msk.f32.mxu1 %vm3192_vm0, %v4739_v1 }
  0x40   : > { %1078 = vperm.xlu0 %3084, %v935_v39   ;;  %1083 = vperm.xlu1 %3085, %v936_v40  }
  0x42   : > { %2857 = vmatmul.mubr.msk.f32.gmra.mrb[18].mxu0 %vm433_vm1, %v393_v41  ;;  %2926 = vmatmul.mubr.msk.f32.gmra.mrb[18].mxu1 %vm433_vm1, %v416_v42 }
  0x43   : > { %2859 = vmatprep.mubr.msk.f32.mxu0 %vm3192_vm0, %v4739_v1  ;;  %2928 = vmatprep.mubr.msk.f32.mxu1 %vm3192_vm0, %v4739_v1 }
  0x44   : > { %998 = vperm.xlu0 %3084, %v919_v43   ;;  %1003 = vperm.xlu1 %3085, %v920_v44  }
  0x46   : > { %2860 = vmatmul.mubr.msk.f32.gmra.mrb[20].mxu0 %vm433_vm1, %v394_v45  ;;  %2929 = vmatmul.mubr.msk.f32.gmra.mrb[20].mxu1 %vm433_vm1, %v417_v46  ;;  %v3645_v45 = vld [vmem:[%s4732_s3] ss:$0 sm:$0xff] }
  0x47   : > { %2862 = vmatprep.mubr.msk.f32.mxu0 %vm3192_vm0, %v4739_v1  ;;  %2931 = vmatprep.mubr.msk.f32.mxu1 %vm3192_vm0, %v4739_v1 }
  0x48   : > { %1088 = vperm.xlu0 %3084, %v937_v47   ;;  %1093 = vperm.xlu1 %3085, %v938_v48  }
  0x4a   : > { %2863 = vmatmul.mubr.msk.f32.gmra.mrb[22].mxu0 %vm433_vm1, %v395_v49  ;;  %2932 = vmatmul.mubr.msk.f32.gmra.mrb[22].mxu1 %vm433_vm1, %v418_v50 }
  0x4b   : > { %2865 = vmatprep.mubr.msk.f32.mxu0 %vm3192_vm0, %v4739_v1  ;;  %2934 = vmatprep.mubr.msk.f32.mxu1 %vm3192_vm0, %v4739_v1 }
  0x4c   : > { %1008 = vperm.xlu0 %3084, %v921_v51   ;;  %1013 = vperm.xlu1 %3085, %v922_v52  }
  0x4e   : > { %2866 = vmatmul.mubr.msk.f32.gmra.mrb[24].mxu0 %vm433_vm1, %v396_v53  ;;  %2935 = vmatmul.mubr.msk.f32.gmra.mrb[24].mxu1 %vm433_vm1, %v419_v54 }
  0x4f   : > { %2868 = vmatprep.mubr.msk.f32.mxu0 %vm3192_vm0, %v4739_v1  ;;  %2937 = vmatprep.mubr.msk.f32.mxu1 %vm3192_vm0, %v4739_v1 }
  0x50   : > { %1098 = vperm.xlu0 %3084, %v939_v55   ;;  %1103 = vperm.xlu1 %3085, %v940_v56  }
  0x52   : > { %2869 = vmatmul.mubr.msk.f32.gmra.mrb[26].mxu0 %vm433_vm1, %v397_v57  ;;  %2938 = vmatmul.mubr.msk.f32.gmra.mrb[26].mxu1 %vm433_vm1, %v420_v58 }
  0x53   : > { %2871 = vmatprep.mubr.msk.f32.mxu0 %vm3192_vm0, %v4739_v1  ;;  %2940 = vmatprep.mubr.msk.f32.mxu1 %vm3192_vm0, %v4739_v1 }
  0x54   : > { %1018 = vperm.xlu0 %3084, %v923_v59   ;;  %1023 = vperm.xlu1 %3085, %v924_v60  }
  0x56   : > { %2872 = vmatmul.mubr.msk.f32.gmra.mrb[28].mxu0 %vm433_vm1, %v398_v61  ;;  %2941 = vmatmul.mubr.msk.f32.gmra.mrb[28].mxu1 %vm433_vm1, %v421_v62 }
  0x57   : > { %2874 = vmatprep.mubr.msk.f32.mxu0 %vm3192_vm0, %v4739_v1  ;;  %2943 = vmatprep.mubr.msk.f32.mxu1 %vm3192_vm0, %v4739_v1 }
  0x58   : > { %1108 = vperm.xlu0 %3084, %v941_v63   ;;  %1113 = vperm.xlu1 %3085, %v942_v0  }
  0x5a   : > { %2875 = vmatmul.mubr.msk.f32.gmra.mrb[30].mxu0 %vm433_vm1, %v399_v2  ;;  %2944 = vmatmul.mubr.msk.f32.gmra.mrb[30].mxu1 %vm433_vm1, %v422_v3 }
  0x5b   : > { %2877 = vmatprep.mubr.msk.f32.mxu0 %vm3192_vm0, %v4739_v1  ;;  %2946 = vmatprep.mubr.msk.f32.mxu1 %vm3192_vm0, %v4739_v1 }
  0x5c   : > { %1028 = vperm.xlu0 %3084, %v925_v4   ;;  %1118 = vperm.xlu1 %3085, %v943_v5  }
  0x5e   : > { %2878 = vmatmul.mubr.msk.f32.gmra.mrb[32].mxu0 %vm433_vm1, %v400_v6  ;;  %2947 = vmatmul.mubr.msk.f32.gmra.mrb[32].mxu1 %vm433_vm1, %v423_v7 }
  0x5f   : > { %2880 = vmatprep.mubr.msk.f32.mxu0 %vm3192_vm0, %v4739_v1  ;;  %2949 = vmatprep.mubr.msk.f32.mxu1 %vm3192_vm0, %v4739_v1 }
  0x60   : > { %1123 = vperm.xlu0 %3084, %v944_v8   ;;  %1128 = vperm.xlu1 %3085, %v945_v9  }
  0x62   : > { %2881 = vmatmul.mubr.msk.f32.gmra.mrb[34].mxu0 %vm433_vm1, %v401_v10  ;;  %2950 = vmatmul.mubr.msk.f32.gmra.mrb[34].mxu1 %vm433_vm1, %v424_v11 }
  0x63   : > { %2883 = vmatprep.mubr.msk.f32.mxu0 %vm3192_vm0, %v4739_v1 }
  0x64   : > { %1133 = vperm.xlu0 %3084, %v946_v12   ;;  %1138 = vperm.xlu1 %3085, %v947_v13  }
  0x66   : > { %2884 = vmatmul.mubr.msk.f32.gmra.mrb[36].mxu0 %vm433_vm1, %v402_v14 }
  0x67   : > { %2886 = vmatprep.mubr.msk.f32.mxu0 %vm3192_vm0, %v4739_v1 }
  0x68   : > { %1143 = vperm.xlu0 %3084, %v948_v15   ;;  %1148 = vperm.xlu1 %3085, %v949_v16  }
  0x6a   : > { %2887 = vmatmul.mubr.msk.f32.gmra.mrb[38].mxu0 %vm433_vm1, %v403_v17 }
  0x6b   : > { %2889 = vmatprep.mubr.msk.f32.mxu0 %vm3192_vm0, %v4739_v1 }
  0x6c   : > { %1153 = vperm.xlu0 %3084, %v950_v18   ;;  %2273 = vperm.xlu1 %3085, %v2270_v19  }
  0x6e   : > { %2890 = vmatmul.mubr.msk.f32.gmra.mrb[40].mxu0 %vm433_vm1, %v404_v20 }
  0x6f   : > { %2892 = vmatprep.mubr.msk.f32.mxu0 %vm3192_vm0, %v4739_v1 }
  0x72   : > { %2893 = vmatmul.mubr.msk.f32.gmra.mrb[42].mxu0 %vm433_vm1, %v405_v21 }
  0x73   : > { %2895 = vmatprep.mubr.msk.f32.mxu0 %vm3192_vm0, %v4739_v1 }
  0x76   : > { %2896 = vmatmul.mubr.msk.f32.gmra.mrb[44].mxu0 %vm433_vm1, %v406_v22 }
  0x9a   : > { %v3608_v23 = vpop.permute.xlu0 %1033  ;;  %v3610_v24 = vpop.permute.xlu1 %1043 }
  0x9f   : > { %v3612_v25 = vpop.permute.xlu0 %1038  ;;  %v954_v26 = vpop.permute.xlu1 %953 }
  0xa3   : > { %v959_v27 = vpop.permute.xlu0 %958  ;;  %v3614_v28 = vpop.permute.xlu1 %963 }
  0xa7   : > { %v3616_v29 = vpop.permute.xlu0 %1048  ;;  %v3618_v30 = vpop.permute.xlu1 %1053 }
  0xab   : > { %v3620_v31 = vpop.permute.xlu0 %968  ;;  %v3622_v32 = vpop.permute.xlu1 %973 }
  0xaf   : > { %v3624_v33 = vpop.permute.xlu0 %1058  ;;  %v3626_v34 = vpop.permute.xlu1 %1063 }
  0xb3   : > { %v3628_v35 = vpop.permute.xlu0 %978  ;;  %v3630_v36 = vpop.permute.xlu1 %983 }
  0xb7   : > { %v1069_v37 = vpop.permute.xlu0 %1068  ;;  %v1074_v38 = vpop.permute.xlu1 %1073 }
  0xbb   : > { %v3632_v39 = vpop.permute.xlu0 %988  ;;  %v3634_v40 = vpop.permute.xlu1 %993 }
  0xbf   : > { %v1079_v41 = vpop.permute.xlu0 %1078  ;;  %v3636_v42 = vpop.permute.xlu1 %1083 }
  0xc3   : > { %v3638_v43 = vpop.permute.xlu0 %998  ;;  %v3640_v44 = vpop.permute.xlu1 %1003 }
  0xc7   : > { %v3647_v46 = vpop.permute.xlu0 %1088  ;;  %v3651_v55 = vpop.permute.xlu1 %1093 }
  0xcb   : > { %v3655_v5 = vpop.permute.xlu0 %1008  ;;  %v3661_v18 = vpop.permute.xlu1 %1013 }
  0xf1   : > { %v623_v47 = vpop.f32.mrb[0].mxu0  ;;  %v738_v48 = vpop.f32.mrb[0].mxu1 }
  0xf2   : > { %v624_v49 = vadd.f32 %v3645_v45, %v623_v47  ;;  %v2831_v50 = vpop.f32.mrb[1].mxu0  ;;  %v739_v51 = vadd.f32 %v3645_v45, %v738_v48  ;;  %v2900_v52 = vpop.f32.mrb[1].mxu1 }
  0xf4   : > { %v827_v53 = vmax.f32 %v624_v49, 0.0  ;;  %v850_v54 = vmax.f32 %v739_v51, 0.0  ;;  %v3668_v51 = vpop.permute.xlu0 %1098 }
  0xf5   : > { %v628_v56 = vpop.f32.mrb[2].mxu0  ;;  %v743_v57 = vpop.f32.mrb[2].mxu1 }
  0xf6   : > { %v868_v58 = vmin.f32 %v827_v53, 6.0  ;;  %v629_v59 = vadd.f32 %v3645_v45, %v628_v56  ;;  %v2834_v60 = vpop.f32.mrb[3].mxu0  ;;  %v891_v61 = vmin.f32 %v850_v54, 6.0  ;;  %v744_v62 = vadd.f32 %v3645_v45, %v743_v57  ;;  %v2903_v63 = vpop.f32.mrb[3].mxu1 }
  0xf8   : > { %v1156_v0 = vmul.f32 %v954_v26, %v868_v58  ;;  %v828_v2 = vmax.f32 %v629_v59, 0.0  ;;  %v1179_v3 = vmul.f32 %v1069_v37, %v891_v61  ;;  %v851_v4 = vmax.f32 %v744_v62, 0.0 }
  0xf9   : > { %v633_v6 = vpop.f32.mrb[4].mxu0  ;;  %v748_v7 = vpop.f32.mrb[4].mxu1 }
  0xfa   : > { %1198 = vst.msk [vmem:[#allocation2] sm:$0xff] %vm1197_vm2, %v1156_v0  ;;  %v869_v8 = vmin.f32 %v828_v2, 6.0  ;;  %v634_v9 = vadd.f32 %v3645_v45, %v633_v6  ;;  %v2837_v10 = vpop.f32.mrb[5].mxu0  ;;  %1221 = vst.msk [vmem:[#allocation2 + $0xb8] sm:$0xff] %vm1197_vm2, %v1179_v3  ;;  %v892_v11 = vmin.f32 %v851_v4, 6.0  ;;  %v749_v12 = vadd.f32 %v3645_v45, %v748_v7  ;;  %v2906_v13 = vpop.f32.mrb[5].mxu1 }
  0xfb   : > { %v3681_v0 = vpop.permute.xlu1 %1103  ;;  %v3686_v2 = vld [vmem:[%s4733_s4 + $0x1] ss:$0 sm:$0xff]  ;;  %v3691_v7 = vld [vmem:[%s4733_s4 + $0x2] ss:$0 sm:$0xff] }
  0xfc   : > { %v1157_v14 = vmul.f32 %v959_v27, %v869_v8  ;;  %v829_v15 = vmax.f32 %v634_v9, 0.0  ;;  %v1180_v16 = vmul.f32 %v1074_v38, %v892_v11  ;;  %v852_v17 = vmax.f32 %v749_v12, 0.0 }
  0xfd   : > { %v638_v19 = vpop.f32.mrb[6].mxu0  ;;  %v753_v20 = vpop.f32.mrb[6].mxu1 }
  0xfe   : > { %1199 = vst.msk [vmem:[#allocation2 + $0x8] sm:$0xff] %vm1197_vm2, %v1157_v14  ;;  %v870_v21 = vmin.f32 %v829_v15, 6.0  ;;  %v639_v22 = vadd.f32 %v3645_v45, %v638_v19  ;;  %v2840_v26 = vpop.f32.mrb[7].mxu0  ;;  %1222 = vst.msk [vmem:[#allocation2 + $0xc0] sm:$0xff] %vm1197_vm2, %v1180_v16  ;;  %v893_v37 = vmin.f32 %v852_v17, 6.0  ;;  %v754_v47 = vadd.f32 %v3645_v45, %v753_v20  ;;  %v2909_v48 = vpop.f32.mrb[7].mxu1 }
  0xff   : > { %v3701_v26 = vpop.permute.xlu0 %1018 }
 0x100   : > { %v1158_v27 = vmul.f32 %v3614_v28, %v870_v21  ;;  %v830_v38 = vmax.f32 %v639_v22, 0.0  ;;  %v1181_v49 = vmul.f32 %v1079_v41, %v893_v37  ;;  %v853_v50 = vmax.f32 %v754_v47, 0.0  ;;  %v3677_v28 = vld [vmem:[%s4733_s4] ss:$0 sm:$0xff]  ;;  %v3706_v37 = vld [vmem:[%s4733_s4 + $0x6] ss:$0 sm:$0xff] }
 0x101   : > { %v643_v52 = vpop.f32.mrb[8].mxu0  ;;  %v758_v53 = vpop.f32.mrb[8].mxu1  ;;  %v1241_v3 = vld [vmem:[#allocation2] sm:$0xff]  ;;  %v1264_v8 = vld [vmem:[#allocation2 + $0xb8] sm:$0xff] }
 0x102   : > { %1200 = vst.msk [vmem:[#allocation2 + $0x10] sm:$0xff] %vm1197_vm2, %v1158_v27  ;;  %v871_v54 = vmin.f32 %v830_v38, 6.0  ;;  %v644_v56 = vadd.f32 %v3645_v45, %v643_v52  ;;  %v2843_v57 = vpop.f32.mrb[9].mxu0  ;;  %1223 = vst.msk [vmem:[#allocation2 + $0xc8] sm:$0xff] %vm1197_vm2, %v1181_v49  ;;  %v894_v58 = vmin.f32 %v853_v50, 6.0  ;;  %v759_v59 = vadd.f32 %v3645_v45, %v758_v53  ;;  %v2912_v60 = vpop.f32.mrb[9].mxu1 }
 0x103   : > { %v1282_v16 = vmul.f32 %v3677_v28, %v1241_v3  ;;  %v3711_v47 = vld [vmem:[%s4733_s4 + $0x7] ss:$0 sm:$0xff] }
 0x104   : > { %v1159_v41 = vmul.f32 %v3620_v31, %v871_v54  ;;  %v831_v61 = vmax.f32 %v644_v56, 0.0  ;;  %v1182_v62 = vmul.f32 %v3636_v42, %v894_v58  ;;  %v854_v63 = vmax.f32 %v759_v59, 0.0 }
 0x105   : > { %v648_v4 = vpop.f32.mrb[10].mxu0  ;;  %v763_v6 = vpop.f32.mrb[10].mxu1  ;;  %v1318_v31 = vld [vmem:[#allocation2 + $0x1] sm:$0xff]  ;;  %v3723_v56 = vmul.f32 %v3677_v28, %v1264_v8 }
 0x106   : > { %1201 = vst.msk [vmem:[#allocation2 + $0x18] sm:$0xff] %vm1197_vm2, %v1159_v41  ;;  %v872_v42 = vmin.f32 %v831_v61, 6.0  ;;  %v649_v9 = vadd.f32 %v3645_v45, %v648_v4  ;;  %v2846_v10 = vpop.f32.mrb[11].mxu0  ;;  %1224 = vst.msk [vmem:[#allocation2 + $0xd0] sm:$0xff] %vm1197_vm2, %v1182_v62  ;;  %v895_v11 = vmin.f32 %v854_v63, 6.0  ;;  %v764_v12 = vadd.f32 %v3645_v45, %v763_v6  ;;  %v2915_v13 = vpop.f32.mrb[11].mxu1 }
 0x107   : > { %v1242_v14 = vld [vmem:[#allocation2 + $0x8] sm:$0xff]  ;;  %v1359_v17 = vmul.f32 %v3686_v2, %v1318_v31  ;;  %v3713_v48 = vld [vmem:[#allocation2 + $0xbc] sm:$0xff] }
 0x108   : > { %v1431_v15 = vld [vmem:[#allocation2 + $0x2] sm:$0xff]  ;;  %v1160_v19 = vmul.f32 %v3622_v32, %v872_v42  ;;  %v832_v20 = vmax.f32 %v649_v9, 0.0  ;;  %v1183_v21 = vmul.f32 %v3647_v46, %v895_v11  ;;  %v855_v22 = vmax.f32 %v764_v12, 0.0  ;;  %v3747_v11 = vpop.permute.xlu1 %1023 }
 0x109   : > { %v1947_v27 = vld [vmem:[#allocation2 + $0xbd] sm:$0xff]  ;;  %v653_v38 = vpop.f32.mrb[12].mxu0  ;;  %v768_v49 = vpop.f32.mrb[12].mxu1  ;;  %v3718_v46 = vld [vmem:[%s4733_s4 + $0x8] ss:$0 sm:$0xff]  ;;  %v1283_v50 = vmul.f32 %v3677_v28, %v1242_v14  ;;  %v1319_v52 = vld [vmem:[#allocation2 + $0x9] sm:$0xff]  ;;  %v1395_v53 = vadd.f32 %v1359_v17, %v1282_v16  ;;  %v1472_v54 = vmul.f32 %v3691_v7, %v1431_v15  ;;  %v3737_v4 = vmul.f32 %v3706_v37, %v3713_v48 }
 0x10a   : > { %v2060_v32 = vld [vmem:[#allocation2 + $0xbe] sm:$0xff]  ;;  %1202 = vst.msk [vmem:[#allocation2 + $0x20] sm:$0xff] %vm1197_vm2, %v1160_v19  ;;  %v873_v57 = vmin.f32 %v832_v20, 6.0  ;;  %v654_v58 = vadd.f32 %v3645_v45, %v653_v38  ;;  %v2849_v59 = vpop.f32.mrb[13].mxu0  ;;  %1225 = vst.msk [vmem:[#allocation2 + $0xd8] sm:$0xff] %vm1197_vm2, %v1183_v21  ;;  %v896_v60 = vmin.f32 %v855_v22, 6.0  ;;  %v769_v41 = vadd.f32 %v3645_v45, %v768_v49 }
 0x10b   : > { %v2918_v61 = vpop.f32.mrb[13].mxu1  ;;  %v1432_v62 = vld [vmem:[#allocation2 + $0xa] sm:$0xff]  ;;  %v3732_v63 = vld [vmem:[%s4733_s4 + $0x3] ss:$0 sm:$0xff]  ;;  %v1360_v3 = vmul.f32 %v3686_v2, %v1319_v52  ;;  %v3740_v6 = vmul.f32 %v3711_v47, %v1947_v27  ;;  %v3743_v31 = vmul.f32 %v3718_v46, %v2060_v32  ;;  %v3752_v12 = vld [vmem:[%s4733_s4 + $0x4] ss:$0 sm:$0xff]  ;;  %v1508_v21 = vadd.f32 %v1472_v54, %v1395_v53 }
 0x10c   : > { %v1161_v8 = vmul.f32 %v3628_v35, %v873_v57  ;;  %v833_v42 = vmax.f32 %v654_v58, 0.0  ;;  %v1184_v9 = vmul.f32 %v3651_v55, %v896_v60  ;;  %v856_v10 = vmax.f32 %v769_v41, 0.0  ;;  %v1243_v13 = vld [vmem:[#allocation2 + $0x10] sm:$0xff]  ;;  %v3754_v14 = vld [vmem:[#allocation2 + $0xba] sm:$0xff]  ;;  %v3759_v35 = vld [vmem:[%s4733_s4 + $0x5] ss:$0 sm:$0xff] }
 0x10d   : > { %4752 = vst [vmem:[#allocation6_spill] sm:$0xff] %v3743_v31  ;;  %v1644_v15 = vld [vmem:[#allocation2 + $0xbb] sm:$0xff]  ;;  %v658_v16 = vpop.f32.mrb[14].mxu0  ;;  %v773_v17 = vpop.f32.mrb[14].mxu1  ;;  %v1396_v55 = vadd.f32 %v1360_v3, %v1283_v50  ;;  %v1433_v19 = vld [vmem:[#allocation2 + $0x12] sm:$0xff]  ;;  %v1473_v20 = vmul.f32 %v3691_v7, %v1432_v62  ;;  %v3764_v27 = vmul.f32 %v3732_v63, %v3754_v14  ;;  %v1284_v60 = vmul.f32 %v3677_v28, %v1243_v13 }
 0x10e   : > { %v1623_v22 = vld [vmem:[#allocation2 + $0x13] sm:$0xff]  ;;  %1203 = vst.msk [vmem:[#allocation2 + $0x28] sm:$0xff] %vm1197_vm2, %v1161_v8  ;;  %v874_v32 = vmin.f32 %v833_v42, 6.0  ;;  %v659_v38 = vadd.f32 %v3645_v45, %v658_v16  ;;  %v2852_v49 = vpop.f32.mrb[15].mxu0  ;;  %1226 = vst.msk [vmem:[#allocation2 + $0xe0] sm:$0xff] %vm1197_vm2, %v1184_v9  ;;  %v897_v52 = vmin.f32 %v856_v10, 6.0  ;;  %v774_v50 = vadd.f32 %v3645_v45, %v773_v17  ;;  %v1109_v42 = vpop.permute.xlu0 %1108 }
 0x10f   : > { %v2921_v57 = vpop.f32.mrb[15].mxu1  ;;  %v1736_v58 = vld [vmem:[#allocation2 + $0x14] sm:$0xff]  ;;  %v1509_v53 = vadd.f32 %v1473_v20, %v1396_v55  ;;  %v1551_v54 = vmul.f32 %v3732_v63, %v1433_v19  ;;  %v3773_v41 = vmul.f32 %v3752_v12, %v1644_v15  ;;  %v1664_v20 = vmul.f32 %v3752_v12, %v1623_v22 }
 0x110   : > { %v1244_v59 = vld [vmem:[#allocation2 + $0x18] sm:$0xff]  ;;  %v1162_v61 = vmul.f32 %v3630_v36, %v874_v32  ;;  %v834_v62 = vmax.f32 %v659_v38, 0.0  ;;  %v1185_v3 = vmul.f32 %v3668_v51, %v897_v52  ;;  %v857_v8 = vmax.f32 %v774_v50, 0.0 }
 0x111   : > { %4753 = vst [vmem:[#allocation7_spill] sm:$0xff] %v3773_v41  ;;  %v1320_v9 = vld [vmem:[#allocation2 + $0x11] sm:$0xff]  ;;  %v663_v10 = vpop.f32.mrb[16].mxu0  ;;  %v778_v16 = vpop.f32.mrb[16].mxu1  ;;  %v3777_v17 = vld [vmem:[#allocation2 + $0x1a] sm:$0xff]  ;;  %v1587_v55 = vadd.f32 %v1551_v54, %v1508_v21  ;;  %v1777_v13 = vmul.f32 %v3759_v35, %v1736_v58  ;;  %v3782_v15 = vmul.f32 %v3677_v28, %v1244_v59  ;;  %v3792_v59 = vmul.f32 %v3691_v7, %v1433_v19 }
 0x112   : > { %1204 = vst.msk [vmem:[#allocation2 + $0x30] sm:$0xff] %vm1197_vm2, %v1162_v61  ;;  %v875_v36 = vmin.f32 %v834_v62, 6.0  ;;  %v664_v51 = vadd.f32 %v3645_v45, %v663_v10  ;;  %v2855_v32 = vpop.f32.mrb[17].mxu0  ;;  %1227 = vst.msk [vmem:[#allocation2 + $0xe8] sm:$0xff] %vm1197_vm2, %v1185_v3  ;;  %v898_v38 = vmin.f32 %v857_v8, 6.0  ;;  %v779_v49 = vadd.f32 %v3645_v45, %v778_v16  ;;  %v2924_v52 = vpop.f32.mrb[17].mxu1 }
 0x113   : > { %v1624_v21 = vld [vmem:[#allocation2 + $0x1b] sm:$0xff]  ;;  %v1552_v22 = vmul.f32 %v3732_v63, %v3777_v17  ;;  %v1700_v57 = vadd.f32 %v1664_v20, %v1587_v55  ;;  %v1361_v58 = vmul.f32 %v3686_v2, %v1320_v9  ;;  %v1114_v8 = vpop.permute.xlu1 %1113 }
 0x114   : > { %v1737_v50 = vld [vmem:[#allocation2 + $0x1c] sm:$0xff]  ;;  %v1163_v54 = vmul.f32 %v3632_v39, %v875_v36  ;;  %v835_v61 = vmax.f32 %v664_v51, 0.0  ;;  %v1186_v62 = vmul.f32 %v3681_v0, %v898_v38  ;;  %v858_v3 = vmax.f32 %v779_v49, 0.0 }
 0x115   : > { %v1321_v10 = vld [vmem:[#allocation2 + $0x19] sm:$0xff]  ;;  %v668_v16 = vpop.f32.mrb[18].mxu0  ;;  %v783_v32 = vpop.f32.mrb[18].mxu1  ;;  %v1588_v52 = vadd.f32 %v1552_v22, %v1509_v53  ;;  %v1665_v1 = vmul.f32 %v3752_v12, %v1624_v21  ;;  %v3797_v31 = vld [vmem:[#allocation2 + $0x24] sm:$0xff]  ;;  %v1778_v9 = vmul.f32 %v3759_v35, %v1737_v50  ;;  %v1813_v55 = vadd.f32 %v1777_v13, %v1700_v57 }
 0x116   : > { %1205 = vst.msk [vmem:[#allocation2 + $0x38] sm:$0xff] %vm1197_vm2, %v1163_v54  ;;  %v876_v19 = vmin.f32 %v835_v61, 6.0  ;;  %v669_v39 = vadd.f32 %v3645_v45, %v668_v16  ;;  %v2858_v20 = vpop.f32.mrb[19].mxu0  ;;  %1228 = vst.msk [vmem:[#allocation2 + $0xf0] sm:$0xff] %vm1197_vm2, %v1186_v62  ;;  %v899_v0 = vmin.f32 %v858_v3, 6.0  ;;  %v784_v36 = vadd.f32 %v3645_v45, %v783_v32  ;;  %v2927_v51 = vpop.f32.mrb[19].mxu1 }
 0x117   : > { %v1928_v53 = vld [vmem:[#allocation2 + $0x25] sm:$0xff]  ;;  %v1701_v49 = vadd.f32 %v1665_v1, %v1588_v52  ;;  %v1856_v21 = vmul.f32 %v3706_v37, %v3797_v31  ;;  %v1362_v13 = vmul.f32 %v3686_v2, %v1321_v10  ;;  %v1397_v50 = vadd.f32 %v1361_v58, %v1284_v60  ;;  %v3808_v16 = vpop.permute.xlu0 %1028 }
 0x118   : > { %v2041_v38 = vld [vmem:[#allocation2 + $0x26] sm:$0xff]  ;;  %v1164_v22 = vmul.f32 %v3634_v40, %v876_v19  ;;  %v836_v57 = vmax.f32 %v669_v39, 0.0  ;;  %v859_v54 = vmax.f32 %v784_v36, 0.0  ;;  %v1187_v61 = vmul.f32 %v1109_v42, %v899_v0 }
 0x119   : > { %v673_v62 = vpop.f32.mrb[20].mxu0  ;;  %v788_v3 = vpop.f32.mrb[20].mxu1  ;;  %v3810_v32 = vld [vmem:[#allocation2 + $0x2c] sm:$0xff]  ;;  %v1814_v20 = vadd.f32 %v1778_v9, %v1701_v49  ;;  %v1892_v51 = vadd.f32 %v1856_v21, %v1813_v55  ;;  %v1969_v52 = vmul.f32 %v3711_v47, %v1928_v53  ;;  %v2082_v41 = vmul.f32 %v3718_v46, %v2041_v38 }
 0x11a   : > { %v1929_v1 = vld [vmem:[#allocation2 + $0x2d] sm:$0xff]  ;;  %1206 = vst.msk [vmem:[#allocation2 + $0x40] sm:$0xff] %vm1197_vm2, %v1164_v22  ;;  %v877_v60 = vmin.f32 %v836_v57, 6.0  ;;  %v674_v40 = vadd.f32 %v3645_v45, %v673_v62  ;;  %v2861_v58 = vpop.f32.mrb[21].mxu0  ;;  %v900_v42 = vmin.f32 %v859_v54, 6.0  ;;  %1229 = vst.msk [vmem:[#allocation2 + $0xf8] sm:$0xff] %vm1197_vm2, %v1187_v61  ;;  %v789_v10 = vadd.f32 %v3645_v45, %v788_v3  ;;  %v1119_v22 = vpop.permute.xlu1 %1118 }
 0x11b   : > { %v2930_v19 = vpop.f32.mrb[21].mxu1  ;;  %v2042_v39 = vld [vmem:[#allocation2 + $0x2e] sm:$0xff]  ;;  %v1857_v9 = vmul.f32 %v3706_v37, %v3810_v32  ;;  %v1970_v55 = vmul.f32 %v3711_v47, %v1929_v1  ;;  %v1398_v0 = vadd.f32 %v1362_v13, %v3782_v15  ;;  %v1475_v36 = vmul.f32 %v3691_v7, %v3777_v17  ;;  %v3825_v57 = vld [vmem:[#allocation2 + $0x22] sm:$0xff] }
 0x11c   : > { %v1165_v53 = vmul.f32 %v3638_v43, %v877_v60  ;;  %v837_v38 = vmax.f32 %v674_v40, 0.0  ;;  %v860_v49 = vmax.f32 %v789_v10, 0.0  ;;  %v1188_v21 = vmul.f32 %v1114_v8, %v900_v42  ;;  %v3827_v54 = vld [vmem:[#allocation2 + $0x2a] sm:$0xff] }
 0x11d   : > { %v678_v61 = vpop.f32.mrb[22].mxu0  ;;  %v793_v62 = vpop.f32.mrb[22].mxu1  ;;  %v1893_v3 = vadd.f32 %v1857_v9, %v1814_v20  ;;  %v2005_v58 = vadd.f32 %v1969_v52, %v1892_v51  ;;  %v2083_v1 = vmul.f32 %v3718_v46, %v2042_v39  ;;  %v1510_v15 = vadd.f32 %v3792_v59, %v1397_v50  ;;  %v1625_v9 = vld [vmem:[#allocation2 + $0x23] sm:$0xff] }
 0x11e   : > { %1207 = vst.msk [vmem:[#allocation2 + $0x48] sm:$0xff] %vm1197_vm2, %v1165_v53  ;;  %v878_v17 = vmin.f32 %v837_v38, 6.0  ;;  %v679_v43 = vadd.f32 %v3645_v45, %v678_v61  ;;  %v2864_v13 = vpop.f32.mrb[23].mxu0  ;;  %v901_v8 = vmin.f32 %v860_v49, 6.0  ;;  %1230 = vst.msk [vmem:[#allocation2 + $0x100] sm:$0xff] %vm1197_vm2, %v1188_v21  ;;  %v794_v60 = vadd.f32 %v3645_v45, %v793_v62  ;;  %v2933_v40 = vpop.f32.mrb[23].mxu1 }
 0x11f   : > { %v2006_v42 = vadd.f32 %v1970_v55, %v1893_v3  ;;  %v1511_v10 = vadd.f32 %v1475_v36, %v1398_v0  ;;  %v1553_v20 = vmul.f32 %v3732_v63, %v3825_v57  ;;  %v1554_v59 = vmul.f32 %v3732_v63, %v3827_v54  ;;  %v1124_v39 = vpop.permute.xlu0 %1123  ;;  %v1626_v53 = vld [vmem:[#allocation2 + $0x2b] sm:$0xff] }
 0x120   : > { %v1166_v50 = vmul.f32 %v3640_v44, %v878_v17  ;;  %v838_v51 = vmax.f32 %v679_v43, 0.0  ;;  %v861_v52 = vmax.f32 %v794_v60, 0.0  ;;  %v1189_v19 = vmul.f32 %v1119_v22, %v901_v8  ;;  %v3847_v22 = vld [vmem:[%s4734_s5] ss:$0 sm:$0xff] }
 0x121   : > { %v683_v38 = vpop.f32.mrb[24].mxu0  ;;  %v798_v49 = vpop.f32.mrb[24].mxu1  ;;  %v2118_v21 = vadd.f32 %v2082_v41, %v2005_v58  ;;  %v2119_v61 = vadd.f32 %v2083_v1, %v2006_v42  ;;  %v1589_v55 = vadd.f32 %v1553_v20, %v1510_v15  ;;  %v1590_v0 = vadd.f32 %v1554_v59, %v1511_v10  ;;  %v3857_v10 = vld [vmem:[#allocation2 + $0x34] sm:$0xff] }
 0x122   : > { %1208 = vst.msk [vmem:[#allocation2 + $0x50] sm:$0xff] %vm1197_vm2, %v1166_v50  ;;  %v879_v36 = vmin.f32 %v838_v51, 6.0  ;;  %v684_v62 = vadd.f32 %v3645_v45, %v683_v38  ;;  %v2867_v3 = vpop.f32.mrb[25].mxu0  ;;  %v902_v13 = vmin.f32 %v861_v52, 6.0  ;;  %v799_v44 = vadd.f32 %v3645_v45, %v798_v49  ;;  %v2936_v17 = vpop.f32.mrb[25].mxu1  ;;  %1231 = vst.msk [vmem:[#allocation2 + $0x108] sm:$0xff] %vm1197_vm2, %v1189_v19 }
 0x123   : > { %v2162_v41 = vadd.f32 %v3847_v22, %v2119_v61  ;;  %v1666_v58 = vmul.f32 %v3752_v12, %v1625_v9  ;;  %v1667_v1 = vmul.f32 %v3752_v12, %v1626_v53  ;;  %v3854_v15 = vmul.f32 %v3759_v35, %v3713_v48  ;;  %v1129_v42 = vpop.permute.xlu1 %1128  ;;  %v3868_v49 = vld [vmem:[#allocation2 + $0x3c] sm:$0xff] }
 0x124   : > { %v1167_v43 = vmul.f32 %v3655_v5, %v879_v36  ;;  %v839_v8 = vmax.f32 %v684_v62, 0.0  ;;  %v862_v60 = vmax.f32 %v799_v44, 0.0  ;;  %v1190_v40 = vmul.f32 %v1124_v39, %v902_v13  ;;  %v1134_v13 = vpop.permute.xlu0 %1133  ;;  %v1930_v44 = vld [vmem:[#allocation2 + $0x35] sm:$0xff]  ;;  %v1931_v17 = vld [vmem:[#allocation2 + $0x3d] sm:$0xff] }
 0x125   : > { %v688_v20 = vpop.f32.mrb[26].mxu0  ;;  %v803_v59 = vpop.f32.mrb[26].mxu1  ;;  %v3860_v50 = vadd.f32 %v3847_v22, %v2118_v21  ;;  %v1702_v51 = vadd.f32 %v1666_v58, %v1589_v55  ;;  %v1703_v52 = vadd.f32 %v1667_v1, %v1590_v0  ;;  %v1779_v19 = vmul.f32 %v3759_v35, %v3797_v31 }
 0x126   : > { %1209 = vst.msk [vmem:[#allocation2 + $0x58] sm:$0xff] %vm1197_vm2, %v1167_v43  ;;  %v880_v48 = vmin.f32 %v839_v8, 6.0  ;;  %v689_v5 = vadd.f32 %v3645_v45, %v688_v20  ;;  %v2870_v9 = vpop.f32.mrb[27].mxu0  ;;  %v903_v39 = vmin.f32 %v862_v60, 6.0  ;;  %v804_v53 = vadd.f32 %v3645_v45, %v803_v59  ;;  %1232 = vst.msk [vmem:[#allocation2 + $0x110] sm:$0xff] %vm1197_vm2, %v1190_v40  ;;  %v2939_v38 = vpop.f32.mrb[27].mxu1 }
 0x127   : > { %v2198_v21 = vmax.f32 %v2162_v41, 0.0  ;;  %v1780_v61 = vmul.f32 %v3759_v35, %v3810_v32  ;;  %v1815_v55 = vadd.f32 %v1779_v19, %v1702_v51  ;;  %v1858_v31 = vmul.f32 %v3706_v37, %v3857_v10  ;;  %v2043_v51 = vld [vmem:[#allocation2 + $0x36] sm:$0xff]  ;;  %v2044_v19 = vld [vmem:[#allocation2 + $0x3e] sm:$0xff] }
 0x128   : > { %v1168_v0 = vmul.f32 %v3661_v18, %v880_v48  ;;  %v840_v36 = vmax.f32 %v689_v5, 0.0  ;;  %v863_v62 = vmax.f32 %v804_v53, 0.0  ;;  %v1191_v3 = vmul.f32 %v1129_v42, %v903_v39 }
 0x129   : > { %v693_v58 = vpop.f32.mrb[28].mxu0  ;;  %v808_v1 = vpop.f32.mrb[28].mxu1  ;;  %v2197_v43 = vmax.f32 %v3860_v50, 0.0  ;;  %v1816_v41 = vadd.f32 %v1780_v61, %v1703_v52  ;;  %v1859_v32 = vmul.f32 %v3706_v37, %v3868_v49  ;;  %v1894_v8 = vadd.f32 %v1858_v31, %v1815_v55  ;;  %v3887_v55 = vld [vmem:[#allocation2 + $0xc4] sm:$0xff] }
 0x12a   : > { %1210 = vst.msk [vmem:[#allocation2 + $0x60] sm:$0xff] %vm1197_vm2, %v1168_v0  ;;  %v881_v60 = vmin.f32 %v840_v36, 6.0  ;;  %v904_v40 = vmin.f32 %v863_v62, 6.0  ;;  %v694_v18 = vadd.f32 %v3645_v45, %v693_v58  ;;  %v2873_v20 = vpop.f32.mrb[29].mxu0  ;;  %v809_v42 = vadd.f32 %v3645_v45, %v808_v1  ;;  %1233 = vst.msk [vmem:[#allocation2 + $0x118] sm:$0xff] %vm1197_vm2, %v1191_v3  ;;  %v2942_v59 = vpop.f32.mrb[29].mxu1 }
 0x12b   : > { %v3882_v50 = vmin.f32 %v2198_v21, 6.0  ;;  %v1895_v52 = vadd.f32 %v1859_v32, %v1816_v41  ;;  %v1971_v48 = vmul.f32 %v3711_v47, %v1930_v44  ;;  %v1972_v5 = vmul.f32 %v3711_v47, %v1931_v17  ;;  %v1139_v61 = vpop.permute.xlu1 %1138  ;;  %v1948_v41 = vld [vmem:[#allocation2 + $0xc5] sm:$0xff] }
 0x12c   : > { %v1169_v9 = vmul.f32 %v3701_v26, %v881_v60  ;;  %v841_v39 = vmax.f32 %v694_v18, 0.0  ;;  %v864_v53 = vmax.f32 %v809_v42, 0.0  ;;  %v1192_v38 = vmul.f32 %v1134_v13, %v904_v40 }
 0x12d   : > { %v698_v31 = vpop.f32.mrb[30].mxu0  ;;  %v813_v0 = vpop.f32.mrb[30].mxu1  ;;  %v2007_v36 = vadd.f32 %v1971_v48, %v1894_v8  ;;  %v2008_v62 = vadd.f32 %v1972_v5, %v1895_v52  ;;  %v2084_v21 = vmul.f32 %v3718_v46, %v2043_v51  ;;  %v2085_v3 = vmul.f32 %v3718_v46, %v2044_v19  ;;  %v3902_v19 = vld [vmem:[#allocation2 + $0xcc] sm:$0xff] }
 0x12e   : > { %1211 = vst.msk [vmem:[#allocation2 + $0x68] sm:$0xff] %vm1197_vm2, %v1169_v9  ;;  %v882_v44 = vmin.f32 %v841_v39, 6.0  ;;  %v905_v17 = vmin.f32 %v864_v53, 6.0  ;;  %v699_v26 = vadd.f32 %v3645_v45, %v698_v31  ;;  %1234 = vst.msk [vmem:[#allocation2 + $0x120] sm:$0xff] %vm1197_vm2, %v1192_v38  ;;  %v2876_v13 = vpop.f32.mrb[31].mxu0  ;;  %v814_v58 = vadd.f32 %v3645_v45, %v813_v0  ;;  %v2945_v1 = vpop.f32.mrb[31].mxu1 }
 0x12f   : > { %v3895_v32 = vmin.f32 %v2197_v43, 6.0  ;;  %v2120_v8 = vadd.f32 %v2084_v21, %v2007_v36  ;;  %v2121_v60 = vadd.f32 %v2085_v3, %v2008_v62  ;;  %v3899_v40 = vmul.f32 %v3706_v37, %v3887_v55  ;;  %v1144_v51 = vpop.permute.xlu0 %1143  ;;  %v1949_v52 = vld [vmem:[#allocation2 + $0xcd] sm:$0xff]  ;;  %v1245_v38 = vld [vmem:[#allocation2 + $0x20] sm:$0xff] }
 0x130   : > { %v1170_v18 = vmul.f32 %v3747_v11, %v882_v44  ;;  %v842_v20 = vmax.f32 %v699_v26, 0.0  ;;  %v865_v42 = vmax.f32 %v814_v58, 0.0  ;;  %v1193_v59 = vmul.f32 %v1139_v61, %v905_v17  ;;  %v2061_v48 = vld [vmem:[#allocation2 + $0xc6] sm:$0xff] }
 0x131   : > { %v703_v5 = vpop.f32.mrb[32].mxu0  ;;  %v818_v9 = vpop.f32.mrb[32].mxu1  ;;  %v2164_v39 = vadd.f32 %v3847_v22, %v2121_v60  ;;  %v3909_v53 = vmul.f32 %v3706_v37, %v3902_v19  ;;  %v3912_v11 = vmul.f32 %v3711_v47, %v1948_v41  ;;  %v1246_v61 = vld [vmem:[#allocation2 + $0x28] sm:$0xff]  ;;  %v2163_v26 = vadd.f32 %v3847_v22, %v2120_v8 }
 0x132   : > { %1212 = vst.msk [vmem:[#allocation2 + $0x70] sm:$0xff] %vm1197_vm2, %v1170_v18  ;;  %v883_v31 = vmin.f32 %v842_v20, 6.0  ;;  %v906_v0 = vmin.f32 %v865_v42, 6.0  ;;  %1235 = vst.msk [vmem:[#allocation2 + $0x128] sm:$0xff] %vm1197_vm2, %v1193_v59  ;;  %v704_v36 = vadd.f32 %v3645_v45, %v703_v5  ;;  %v819_v62 = vadd.f32 %v3645_v45, %v818_v9  ;;  %v2879_v21 = vpop.f32.mrb[33].mxu0  ;;  %v2948_v3 = vpop.f32.mrb[33].mxu1 }
 0x133   : > { %v1322_v44 = vld [vmem:[#allocation2 + $0x21] sm:$0xff]  ;;  %v1323_v17 = vld [vmem:[#allocation2 + $0x29] sm:$0xff]  ;;  %v2200_v13 = vmax.f32 %v2164_v39, 0.0  ;;  %v3920_v58 = vmul.f32 %v3711_v47, %v1949_v52  ;;  %v3923_v1 = vmul.f32 %v3718_v46, %v2061_v48  ;;  %v1286_v5 = vmul.f32 %v3677_v28, %v1245_v38 }
 0x134   : > { %v1171_v41 = vmul.f32 %v3808_v16, %v883_v31  ;;  %v843_v60 = vmax.f32 %v704_v36, 0.0  ;;  %v866_v18 = vmax.f32 %v819_v62, 0.0  ;;  %v1194_v20 = vmul.f32 %v1144_v51, %v906_v0  ;;  %v3934_v0 = vld [vmem:[#allocation2 + $0x32] sm:$0xff]  ;;  %v3936_v38 = vld [vmem:[#allocation2 + $0x3a] sm:$0xff] }
 0x135   : > { %v708_v42 = vpop.f32.mrb[34].mxu0  ;;  %v823_v59 = vpop.f32.mrb[34].mxu1  ;;  %v1287_v9 = vmul.f32 %v3677_v28, %v1246_v61  ;;  %v1363_v8 = vmul.f32 %v3686_v2, %v1322_v44  ;;  %v1364_v39 = vmul.f32 %v3686_v2, %v1323_v17  ;;  %v2199_v36 = vmax.f32 %v2163_v26, 0.0 }
 0x136   : > { %1213 = vst.msk [vmem:[#allocation2 + $0x78] sm:$0xff] %vm1197_vm2, %v1171_v41  ;;  %v884_v52 = vmin.f32 %v843_v60, 6.0  ;;  %v907_v48 = vmin.f32 %v866_v18, 6.0  ;;  %1236 = vst.msk [vmem:[#allocation2 + $0x130] sm:$0xff] %vm1197_vm2, %v1194_v20  ;;  %v709_v16 = vadd.f32 %v3645_v45, %v708_v42  ;;  %v824_v51 = vadd.f32 %v3645_v45, %v823_v59  ;;  %v2882_v31 = vpop.f32.mrb[35].mxu0  ;;  %v1149_v61 = vpop.permute.xlu1 %1148  ;;  %v1627_v20 = vld [vmem:[#allocation2 + $0x33] sm:$0xff] }
 0x137   : > { %v1399_v62 = vadd.f32 %v1363_v8, %v1286_v5  ;;  %v1400_v21 = vadd.f32 %v1364_v39, %v1287_v9  ;;  %v1476_v3 = vmul.f32 %v3691_v7, %v3825_v57  ;;  %v2951_v44 = vpop.f32.mrb[35].mxu1  ;;  %v1477_v59 = vmul.f32 %v3691_v7, %v3827_v54  ;;  %v1628_v9 = vld [vmem:[#allocation2 + $0x3b] sm:$0xff]  ;;  %v3952_v54 = vld [vmem:[#allocation2 + $0x44] sm:$0xff] }
 0x138   : > { %v1172_v17 = vmul.f32 %v3608_v23, %v884_v52  ;;  %v1195_v41 = vmul.f32 %v1149_v61, %v907_v48  ;;  %v844_v60 = vmax.f32 %v709_v16, 0.0  ;;  %v867_v18 = vmax.f32 %v824_v51, 0.0  ;;  %4755 = vst [vmem:[#allocation9_spill] sm:$0xff] %v3952_v54  ;;  %v1154_v48 = vpop.permute.xlu0 %1153  ;;  %v2062_v51 = vld [vmem:[#allocation2 + $0xce] sm:$0xff] }
 0x139   : > { %v713_v42 = vpop.f32.mrb[36].mxu0  ;;  %v1512_v31 = vadd.f32 %v1476_v3, %v1399_v62  ;;  %v1555_v26 = vmul.f32 %v3732_v63, %v3934_v0  ;;  %v1556_v5 = vmul.f32 %v3732_v63, %v3936_v38  ;;  %v3950_v52 = vmin.f32 %v2200_v13, 6.0 }
 0x13a   : > { %1214 = vst.msk [vmem:[#allocation2 + $0x80] sm:$0xff] %vm1197_vm2, %v1172_v17  ;;  %1237 = vst.msk [vmem:[#allocation2 + $0x138] sm:$0xff] %vm1197_vm2, %v1195_v41  ;;  %v885_v23 = vmin.f32 %v844_v60, 6.0  ;;  %v908_v57 = vmin.f32 %v867_v18, 6.0  ;;  %v714_v8 = vadd.f32 %v3645_v45, %v713_v42  ;;  %v2885_v39 = vpop.f32.mrb[37].mxu0  ;;  %v3954_v16 = vmin.f32 %v2199_v36, 6.0 }
 0x13b   : > { %4754 = vst [vmem:[#allocation8_spill] sm:$0xff] %v3950_v52  ;;  %v1513_v61 = vadd.f32 %v1477_v59, %v1400_v21  ;;  %v1591_v62 = vadd.f32 %v1555_v26, %v1512_v31  ;;  %v1668_v3 = vmul.f32 %v3752_v12, %v1627_v20  ;;  %v1669_v60 = vmul.f32 %v3752_v12, %v1628_v9  ;;  %v3959_v18 = vld [vmem:[#allocation2 + $0x4c] sm:$0xff]  ;;  %v1341_v31 = vld [vmem:[#allocation2 + $0xb9] sm:$0xff] }
 0x13c   : > { %4756 = vst [vmem:[#allocation10_spill] sm:$0xff] %v3954_v16  ;;  %v1173_v44 = vmul.f32 %v3612_v25, %v885_v23  ;;  %v1196_v17 = vmul.f32 %v1154_v48, %v908_v57  ;;  %v845_v41 = vmax.f32 %v714_v8, 0.0  ;;  %4757 = vst [vmem:[#allocation11_spill] sm:$0xff] %v3959_v18  ;;  %v1781_v36 = vmul.f32 %v3759_v35, %v3857_v10  ;;  %v1932_v59 = vld [vmem:[#allocation2 + $0x45] sm:$0xff]  ;;  %v1933_v10 = vld [vmem:[#allocation2 + $0x4d] sm:$0xff] }
 0x13d   : > { %v718_v13 = vpop.f32.mrb[38].mxu0  ;;  %v1592_v42 = vadd.f32 %v1556_v5, %v1513_v61  ;;  %v1704_v39 = vadd.f32 %v1668_v3, %v1591_v62  ;;  %v1860_v21 = vmul.f32 %v3706_v37, %v3952_v54  ;;  %v3971_v9 = vmul.f32 %v3718_v46, %v2062_v51  ;;  %v2045_v61 = vld [vmem:[#allocation2 + $0x46] sm:$0xff] }
 0x13e   : > { %1215 = vst.msk [vmem:[#allocation2 + $0x88] sm:$0xff] %vm1197_vm2, %v1173_v44  ;;  %v886_v25 = vmin.f32 %v845_v41, 6.0  ;;  %v719_v20 = vadd.f32 %v3645_v45, %v718_v13  ;;  %v2888_v26 = vpop.f32.mrb[39].mxu0  ;;  %v1782_v57 = vmul.f32 %v3759_v35, %v3868_v49  ;;  %v1861_v48 = vmul.f32 %v3706_v37, %v3959_v18 }
 0x13f   : > { %1239 = vst.msk [vmem:[#allocation2 + $0x140] sm:$0xf] %vm1238_vm3, %v1196_v17  ;;  %4758 = vst [vmem:[#allocation12_spill] sm:$0xff] %v3971_v9  ;;  %v1705_v23 = vadd.f32 %v1669_v60, %v1592_v42  ;;  %v1817_v8 = vadd.f32 %v1781_v36, %v1704_v39  ;;  %v1973_v44 = vmul.f32 %v3711_v47, %v1932_v59  ;;  %v2046_v17 = vld [vmem:[#allocation2 + $0x4e] sm:$0xff] }
 0x140   : > { %v1174_v62 = vmul.f32 %v3610_v24, %v886_v25  ;;  %v846_v3 = vmax.f32 %v719_v20, 0.0  ;;  %v1382_v41 = vmul.f32 %v3686_v2, %v1341_v31  ;;  %v1974_v42 = vmul.f32 %v3711_v47, %v1933_v10  ;;  %v3987_v31 = vld [vmem:[#allocation2 + $0xc2] sm:$0xff] }
 0x141   : > { %v723_v51 = vpop.f32.mrb[40].mxu0  ;;  %v1257_v13 = vld [vmem:[#allocation2 + $0x80] sm:$0xff]  ;;  %v1818_v26 = vadd.f32 %v1782_v57, %v1705_v23  ;;  %v1896_v60 = vadd.f32 %v1860_v21, %v1817_v8  ;;  %v1495_v49 = vmul.f32 %v3691_v7, %v3754_v14  ;;  %v2086_v59 = vmul.f32 %v3718_v46, %v2045_v61  ;;  %4759 = vst [vmem:[#allocation13_spill] sm:$0xff] %v3987_v31  ;;  %v3990_v57 = vld [vmem:[#allocation2 + $0xca] sm:$0xff] }
 0x142   : > { %1216 = vst.msk [vmem:[#allocation2 + $0x90] sm:$0xff] %vm1197_vm2, %v1174_v62  ;;  %v887_v39 = vmin.f32 %v846_v3, 6.0  ;;  %v724_v24 = vadd.f32 %v3645_v45, %v723_v51  ;;  %v2891_v36 = vpop.f32.mrb[41].mxu0  ;;  %v1418_v25 = vadd.f32 %v1382_v41, %v3723_v56  ;;  %v1645_v20 = vld [vmem:[#allocation2 + $0xc3] sm:$0xff]  ;;  %v2087_v10 = vmul.f32 %v3718_v46, %v2046_v17  ;;  %4760 = vst [vmem:[#allocation14_spill] sm:$0xff] %v3990_v57  ;;  %v1646_v8 = vld [vmem:[#allocation2 + $0xcb] sm:$0xff] }
 0x143   : > { %v1897_v23 = vadd.f32 %v1861_v48, %v1818_v26  ;;  %v2009_v21 = vadd.f32 %v1973_v44, %v1896_v60  ;;  %v3994_v14 = vmul.f32 %v3732_v63, %v3987_v31  ;;  %v1298_v61 = vmul.f32 %v3677_v28, %v1257_v13 }
 0x144   : > { %v1175_v62 = vmul.f32 %v3616_v29, %v887_v39  ;;  %v847_v3 = vmax.f32 %v724_v24, 0.0  ;;  %v1574_v56 = vmul.f32 %v3732_v63, %v3990_v57  ;;  %v1531_v17 = vadd.f32 %v1495_v49, %v1418_v25 }
 0x145   : > { %v728_v41 = vpop.f32.mrb[42].mxu0  ;;  %v1334_v48 = vld [vmem:[#allocation2 + $0x81] sm:$0xff]  ;;  %v2010_v44 = vadd.f32 %v1974_v42, %v1897_v23  ;;  %v2122_v51 = vadd.f32 %v2086_v59, %v2009_v21  ;;  %v4001_v26 = vmul.f32 %v3752_v12, %v1645_v20  ;;  %v1687_v24 = vmul.f32 %v3752_v12, %v1646_v8  ;;  %v4008_v59 = vld [vmem:[#allocation2 + $0xd4] sm:$0xff] }
 0x146   : > { %1217 = vst.msk [vmem:[#allocation2 + $0x98] sm:$0xff] %vm1197_vm2, %v1175_v62  ;;  %v888_v60 = vmin.f32 %v847_v3, 6.0  ;;  %v729_v36 = vadd.f32 %v3645_v45, %v728_v41  ;;  %v2894_v29 = vpop.f32.mrb[43].mxu0  ;;  %v1258_v39 = vld [vmem:[#allocation2 + $0x88] sm:$0xff]  ;;  %v1375_v13 = vmul.f32 %v3686_v2, %v1334_v48  ;;  %4761 = vst [vmem:[#allocation15_spill] sm:$0xff] %v4008_v59  ;;  %v4012_v49 = vmul.f32 %v3759_v35, %v3887_v55 }
 0x147   : > { %v1447_v5 = vld [vmem:[#allocation2 + $0x82] sm:$0xff]  ;;  %v2123_v43 = vadd.f32 %v2087_v10, %v2010_v44  ;;  %v2165_v42 = vadd.f32 %v3847_v22, %v2122_v51  ;;  %v4016_v25 = vmul.f32 %v3759_v35, %v3902_v19  ;;  %v4021_v21 = vmul.f32 %v3706_v37, %v4008_v59  ;;  %v1950_v10 = vld [vmem:[#allocation2 + $0xd5] sm:$0xff] }
 0x148   : > { %4762 = vst [vmem:[#allocation16_spill] sm:$0xff] %v4012_v49  ;;  %v1176_v45 = vmul.f32 %v3618_v30, %v888_v60  ;;  %v848_v20 = vmax.f32 %v729_v36, 0.0  ;;  %v1411_v23 = vadd.f32 %v1375_v13, %v1298_v61  ;;  %v1299_v62 = vmul.f32 %v3677_v28, %v1258_v39  ;;  %v3086_v30 = vld [vmem:[%s4732_s3] ss:$0 sm:$0xff] }
 0x149   : > { %4763 = vst [vmem:[#allocation17_spill] sm:$0xff] %v4021_v21  ;;  %v733_v8 = vpop.f32.mrb[44].mxu0  ;;  %v1335_v3 = vld [vmem:[#allocation2 + $0x89] sm:$0xff]  ;;  %v2166_v55 = vadd.f32 %v3847_v22, %v2123_v43  ;;  %v2201_v48 = vmax.f32 %v2165_v42, 0.0  ;;  %v1610_v44 = vadd.f32 %v1574_v56, %v1531_v17  ;;  %v1488_v36 = vmul.f32 %v3691_v7, %v1447_v5  ;;  %v4031_v39 = vld [vmem:[#allocation2 + $0xdc] sm:$0xff] }
 0x14a   : > { %v1448_v41 = vld [vmem:[#allocation2 + $0x8a] sm:$0xff]  ;;  %1218 = vst.msk [vmem:[#allocation2 + $0xa0] sm:$0xff] %vm1197_vm2, %v1176_v45  ;;  %v889_v19 = vmin.f32 %v848_v20, 6.0  ;;  %v734_v61 = vadd.f32 %v3086_v30, %v733_v8  ;;  %v2897_v51 = vpop.f32.mrb[45].mxu0  ;;  %v1376_v60 = vmul.f32 %v3686_v2, %v1335_v3  ;;  %4764 = vst [vmem:[#allocation18_spill] sm:$0xff] %v4031_v39  ;;  %v1879_v56 = vmul.f32 %v3706_v37, %v4031_v39  ;;  %v1951_v17 = vld [vmem:[#allocation2 + $0xdd] sm:$0xff] }
 0x14b   : > { %v1259_v29 = vld [vmem:[#allocation2 + $0x90] sm:$0xff]  ;;  %v1489_v43 = vmul.f32 %v3691_v7, %v1448_v41  ;;  %v2202_v13 = vmax.f32 %v2166_v55, 0.0  ;;  %v4037_v42 = vmul.f32 %v3711_v47, %v1950_v10  ;;  %v1524_v30 = vadd.f32 %v1488_v36, %v1411_v23  ;;  %v2064_v23 = vld [vmem:[#allocation2 + $0xde] sm:$0xff] }
 0x14c   : > { %v2063_v45 = vld [vmem:[#allocation2 + $0xd6] sm:$0xff]  ;;  %v1177_v20 = vmul.f32 %v3624_v33, %v889_v19  ;;  %v849_v8 = vmax.f32 %v734_v61, 0.0  ;;  %v1412_v3 = vadd.f32 %v1376_v60, %v1299_v62  ;;  %v1300_v57 = vmul.f32 %v3677_v28, %v1259_v29 }
 0x14d   : > { %4765 = vst [vmem:[#allocation19_spill] sm:$0xff] %v4037_v42  ;;  %v1449_v5 = vld [vmem:[#allocation2 + $0x92] sm:$0xff]  ;;  %v4041_v41 = vmin.f32 %v2201_v48, 6.0  ;;  %v4043_v55 = vmin.f32 %v2202_v13, 6.0  ;;  %v1723_v39 = vadd.f32 %v1687_v24, %v1610_v44  ;;  %v4048_v62 = vmul.f32 %v3711_v47, %v1951_v17 }
 0x14e   : > { %v1639_v51 = vld [vmem:[#allocation2 + $0x93] sm:$0xff]  ;;  %1219 = vst.msk [vmem:[#allocation2 + $0xa8] sm:$0xff] %vm1197_vm2, %v1177_v20  ;;  %v890_v10 = vmin.f32 %v849_v8, 6.0  ;;  %v1567_v31 = vmul.f32 %v3732_v63, %v1449_v5  ;;  %v4051_v19 = vmul.f32 %v3718_v46, %v2063_v45  ;;  %v1525_v61 = vadd.f32 %v1489_v43, %v1412_v3 }
 0x14f   : > { %v1752_v59 = vld [vmem:[#allocation2 + $0x94] sm:$0xff]  ;;  %4766 = vst [vmem:[#allocation20_spill] sm:$0xff] %v4041_v41  ;;  %4767 = vst [vmem:[#allocation21_spill] sm:$0xff] %v4043_v55  ;;  %v1680_v48 = vmul.f32 %v3752_v12, %v1639_v51  ;;  %v1490_v17 = vmul.f32 %v3691_v7, %v1449_v5  ;;  %v4078_v5 = vld [vmem:[%s4733_s4 + $0x1] ss:$0 sm:$0xff] }
 0x150   : > { %v1260_v16 = vld [vmem:[#allocation2 + $0x98] sm:$0xff]  ;;  %4768 = vst [vmem:[#allocation22_spill] sm:$0xff] %v4051_v19  ;;  %v1793_v60 = vmul.f32 %v3759_v35, %v1752_v59  ;;  %v1247_v44 = vld [vmem:[#allocation2 + $0x30] sm:$0xff]  ;;  %v1178_v36 = vmul.f32 %v3626_v34, %v890_v10  ;;  %v1603_v29 = vadd.f32 %v1567_v31, %v1524_v30  ;;  %v1836_v59 = vadd.f32 %v4016_v25, %v1723_v39  ;;  %v4084_v10 = vld [vmem:[%s4733_s4 + $0x2] ss:$0 sm:$0xff] }
 0x151   : > { %v1336_v33 = vld [vmem:[#allocation2 + $0x91] sm:$0xff]  ;;  %v1301_v13 = vmul.f32 %v3677_v28, %v1260_v16  ;;  %v1450_v52 = vld [vmem:[#allocation2 + $0x9a] sm:$0xff] }
 0x152   : > { %v1377_v24 = vmul.f32 %v3686_v2, %v1336_v33  ;;  %v1248_v20 = vld [vmem:[#allocation2 + $0x38] sm:$0xff]  ;;  %v4063_v2 = vmul.f32 %v3718_v46, %v2064_v23  ;;  %1220 = vst.msk [vmem:[#allocation2 + $0xb0] sm:$0xff] %vm1197_vm2, %v1178_v36  ;;  %v1568_v34 = vmul.f32 %v3732_v63, %v1450_v52  ;;  %v1716_v7 = vadd.f32 %v1680_v48, %v1603_v29  ;;  %v1261_v31 = vld [vmem:[#allocation2 + $0xa0] sm:$0xff] }
 0x153   : > { %v1324_v8 = vld [vmem:[#allocation2 + $0x31] sm:$0xff]  ;;  %v1640_v45 = vld [vmem:[#allocation2 + $0x9b] sm:$0xff]  ;;  %v1491_v33 = vmul.f32 %v4084_v10, %v1450_v52 }
 0x154   : > { %v1753_v19 = vld [vmem:[#allocation2 + $0x9c] sm:$0xff]  ;;  %v1413_v43 = vadd.f32 %v1377_v24, %v1300_v57  ;;  %v1681_v28 = vmul.f32 %v3752_v12, %v1640_v45  ;;  %v1604_v48 = vadd.f32 %v1568_v34, %v1525_v61  ;;  %v1829_v24 = vadd.f32 %v1793_v60, %v1716_v7 }
 0x155   : > { %v1337_v16 = vld [vmem:[#allocation2 + $0x99] sm:$0xff]  ;;  %v1794_v39 = vmul.f32 %v3759_v35, %v1753_v19  ;;  %v1915_v19 = vadd.f32 %v1879_v56, %v1836_v59  ;;  %v1754_v36 = vld [vmem:[#allocation2 + $0xa4] sm:$0xff] }
 0x156   : > { %v4071_v57 = vld [vmem:[%s4733_s4] ss:$0 sm:$0xff]  ;;  %v1378_v51 = vmul.f32 %v4078_v5, %v1337_v16  ;;  %v1526_v23 = vadd.f32 %v1490_v17, %v1413_v43  ;;  %v1944_v29 = vld [vmem:[#allocation2 + $0xa5] sm:$0xff]  ;;  %v1365_v16 = vmul.f32 %v4078_v5, %v1324_v8  ;;  %v1717_v42 = vadd.f32 %v1681_v28, %v1604_v48 }
 0x157   : > { %v1288_v30 = vmul.f32 %v4071_v57, %v1247_v44  ;;  %v1325_v25 = vld [vmem:[#allocation2 + $0x39] sm:$0xff]  ;;  %v1302_v44 = vmul.f32 %v4071_v57, %v1261_v31  ;;  %v2057_v45 = vld [vmem:[#allocation2 + $0xa6] sm:$0xff]  ;;  %v4089_v41 = vmul.f32 %v4071_v57, %v1248_v20  ;;  %v1872_v52 = vmul.f32 %v3706_v37, %v1754_v36 }
 0x158   : > { %v1414_v3 = vadd.f32 %v1378_v51, %v1301_v13  ;;  %v4093_v55 = vmul.f32 %v4078_v5, %v1325_v25  ;;  %v1985_v61 = vmul.f32 %v3711_v47, %v1944_v29  ;;  %v2098_v60 = vmul.f32 %v3718_v46, %v2057_v45  ;;  %v1451_v56 = vld [vmem:[#allocation2 + $0xa2] sm:$0xff] }
 0x159   : > { %v1641_v17 = vld [vmem:[#allocation2 + $0xa3] sm:$0xff]  ;;  %v1569_v13 = vmul.f32 %v3732_v63, %v1451_v56  ;;  %v1795_v8 = vmul.f32 %v3759_v35, %v1754_v36  ;;  %v1830_v7 = vadd.f32 %v1794_v39, %v1717_v42  ;;  %v1908_v31 = vadd.f32 %v1872_v52, %v1829_v24  ;;  %v1755_v47 = vld [vmem:[#allocation2 + $0xac] sm:$0xff]  ;;  %v1756_v29 = vld [vmem:[#allocation2 + $0xb4] sm:$0xff] }
 0x15a   : > { %v1262_v43 = vld [vmem:[#allocation2 + $0xa8] sm:$0xff]  ;;  %v1527_v59 = vadd.f32 %v1491_v33, %v1414_v3  ;;  %v1682_v20 = vmul.f32 %v3752_v12, %v1641_v17  ;;  %v1492_v48 = vmul.f32 %v4084_v10, %v1451_v56  ;;  %v4105_v3 = vadd.f32 %v4048_v62, %v1915_v19  ;;  %v4112_v42 = vld [vmem:[%s4733_s4 + $0x6] ss:$0 sm:$0xff]  ;;  %v4118_v33 = vld [vmem:[%s4733_s4 + $0x7] ss:$0 sm:$0xff] }
 0x15b   : > { %v1338_v34 = vld [vmem:[#allocation2 + $0xa1] sm:$0xff]  ;;  %v1303_v28 = vmul.f32 %v4071_v57, %v1262_v43  ;;  %v1945_v25 = vld [vmem:[#allocation2 + $0xad] sm:$0xff]  ;;  %v1605_v51 = vadd.f32 %v1569_v13, %v1526_v23  ;;  %v4107_v63 = vadd.f32 %v1365_v16, %v1288_v30  ;;  %v1873_v39 = vmul.f32 %v4112_v42, %v1755_v47  ;;  %v1946_v17 = vld [vmem:[#allocation2 + $0xb5] sm:$0xff] }
 0x15c   : > { %v1379_v37 = vmul.f32 %v4078_v5, %v1338_v34  ;;  %v2058_v46 = vld [vmem:[#allocation2 + $0xae] sm:$0xff]  ;;  %v1986_v23 = vmul.f32 %v4118_v33, %v1945_v25  ;;  %v2021_v24 = vadd.f32 %v1985_v61, %v1908_v31  ;;  %v4124_v62 = vld [vmem:[%s4733_s4 + $0x8] ss:$0 sm:$0xff]  ;;  %v4130_v45 = vld [vmem:[%s4733_s4 + $0x3] ss:$0 sm:$0xff]  ;;  %v1796_v56 = vmul.f32 %v3759_v35, %v1755_v47 }
 0x15d   : > { %v2099_v30 = vmul.f32 %v4124_v62, %v2058_v46  ;;  %v1452_v19 = vld [vmem:[#allocation2 + $0xaa] sm:$0xff]  ;;  %v1718_v61 = vadd.f32 %v1682_v20, %v1605_v51  ;;  %v2059_v43 = vld [vmem:[#allocation2 + $0xb6] sm:$0xff]  ;;  %v1909_v34 = vadd.f32 %v1873_v39, %v1830_v7  ;;  %v1874_v25 = vmul.f32 %v4112_v42, %v1756_v29 }
 0x15e   : > { %v1642_v36 = vld [vmem:[#allocation2 + $0xab] sm:$0xff]  ;;  %v1570_v16 = vmul.f32 %v4130_v45, %v1452_v19  ;;  %v2134_v31 = vadd.f32 %v2098_v60, %v2021_v24  ;;  %v1987_v46 = vmul.f32 %v4118_v33, %v1946_v17  ;;  %v2100_v49 = vmul.f32 %v4124_v62, %v2059_v43  ;;  %v2269_v60 = vld [vmem:[%s4735_s6] sm:$0xff] }
 0x15f   : > { %v1683_v52 = vmul.f32 %v3752_v12, %v1642_v36  ;;  %v1339_v13 = vld [vmem:[#allocation2 + $0xa9] sm:$0xff]  ;;  %v1453_v18 = vld [vmem:[#allocation2 + $0xb2] sm:$0xff]  ;;  %v1831_v54 = vadd.f32 %v1795_v8, %v1718_v61  ;;  %v2022_v20 = vadd.f32 %v1986_v23, %v1909_v34  ;;  %v1415_v47 = vadd.f32 %v1379_v37, %v1302_v44  ;;  %2820 = vmatprep.mubr.msk.f32.mxu1 %vm1197_vm2, %v2269_v60  ;;  %v4149_v44 = vld [vmem:[%s4733_s4 + $0x4] ss:$0 sm:$0xff] }
 0x160   : > { %v1606_v21 = vadd.f32 %v1570_v16, %v1527_v59  ;;  %v1380_v9 = vmul.f32 %v4078_v5, %v1339_v13  ;;  %v1643_v12 = vld [vmem:[#allocation2 + $0xb3] sm:$0xff]  ;;  %v2177_v35 = vadd.f32 %v3847_v22, %v2134_v31  ;;  %v1493_v51 = vmul.f32 %v4084_v10, %v1452_v19 }
 0x161   : > { %v1910_v39 = vadd.f32 %v1874_v25, %v1831_v54  ;;  %v1571_v59 = vmul.f32 %v4130_v45, %v1453_v18  ;;  %v1263_v8 = vld [vmem:[#allocation2 + $0xb0] sm:$0xff]  ;;  %v2135_v36 = vadd.f32 %v2099_v30, %v2022_v20  ;;  %v1528_v23 = vadd.f32 %v1492_v48, %v1415_v47 }
 0x162   : > { %v1719_v7 = vadd.f32 %v1683_v52, %v1606_v21  ;;  %v1416_v24 = vadd.f32 %v1380_v9, %v1303_v28  ;;  %v2213_v16 = vmax.f32 %v2177_v35, 0.0  ;;  %v1684_v37 = vmul.f32 %v4149_v44, %v1643_v12  ;;  %v1340_v19 = vld [vmem:[#allocation2 + $0xb1] sm:$0xff]  ;;  %v4155_v9 = vld [vmem:[%s4733_s4 + $0x5] ss:$0 sm:$0xff]  ;;  %v4769_v35 = vld [vmem:[#allocation7_spill] sm:$0xff] }
 0x163   : > { %v2023_v21 = vadd.f32 %v1987_v46, %v1910_v39  ;;  %v1797_v28 = vmul.f32 %v4155_v9, %v1756_v29  ;;  %v2178_v48 = vadd.f32 %v3847_v22, %v2135_v36  ;;  %v1607_v52 = vadd.f32 %v1571_v59, %v1528_v23  ;;  %v4181_v36 = vld [vmem:[#allocation2 + $0x42] sm:$0xff] }
 0x164   : > { %v1832_v61 = vadd.f32 %v1796_v56, %v1719_v7  ;;  %v1529_v54 = vadd.f32 %v1493_v51, %v1416_v24  ;;  %v2249_v30 = vmin.f32 %v2213_v16, 6.0  ;;  %v1304_v17 = vmul.f32 %v4071_v57, %v1263_v8 }
 0x165   : > { %v2136_v13 = vadd.f32 %v2100_v49, %v2023_v21  ;;  %v1381_v34 = vmul.f32 %v4078_v5, %v1340_v19  ;;  %v2214_v31 = vmax.f32 %v2178_v48, 0.0  ;;  %v1720_v25 = vadd.f32 %v1684_v37, %v1607_v52  ;;  %v4188_v19 = vld [vmem:[#allocation2 + $0x4a] sm:$0xff] }
 0x166   : > { %v1911_v43 = vadd.f32 %v3737_v4, %v1832_v61  ;;  %v1608_v56 = vadd.f32 %v3764_v27, %v1529_v54  ;;  %v1494_v46 = vmul.f32 %v4084_v10, %v1453_v18  ;;  %v2141_v29 = vadd.f32 %v4063_v2, %v4105_v3  ;;  %v4772_v2 = vld [vmem:[#allocation6_spill] sm:$0xff]  ;;  %v1630_v48 = vld [vmem:[#allocation2 + $0x4b] sm:$0xff] }
 0x167   : > { %v2179_v20 = vadd.f32 %v3847_v22, %v2136_v13  ;;  %v1417_v51 = vadd.f32 %v1381_v34, %v1304_v17  ;;  %v2250_v4 = vmin.f32 %v2214_v31, 6.0  ;;  %v1833_v49 = vadd.f32 %v1797_v28, %v1720_v25  ;;  %v4774_v52 = vld [vmem:[#allocation12_spill] sm:$0xff]  ;;  %v4776_v25 = vld [vmem:[#allocation9_spill] sm:$0xff] }
 0x168   : > { %v2024_v12 = vadd.f32 %v3740_v6, %v1911_v43  ;;  %v1721_v47 = vadd.f32 %v4769_v35, %v1608_v56  ;;  %v2184_v27 = vadd.f32 %v3847_v22, %v2141_v29  ;;  %v1402_v60 = vadd.f32 %v4093_v55, %v4089_v41  ;;  %v4775_v43 = vld [vmem:[#allocation16_spill] sm:$0xff] }
 0x169   : > { %v2215_v3 = vmax.f32 %v2179_v20, 0.0  ;;  %v1530_v39 = vadd.f32 %v1494_v46, %v1417_v51  ;;  %v2963_v24 = vpack.c.bf16 %v2250_v4, %v2249_v30  ;;  %v1912_v59 = vadd.f32 %v3899_v40, %v1833_v49  ;;  %v4213_v56 = vld [vmem:[#allocation2 + $0x54] sm:$0xff]  ;;  %v1935_v4 = vld [vmem:[#allocation2 + $0x5d] sm:$0xff] }
 0x16a   : > { %v2137_v6 = vadd.f32 %v4772_v2, %v2024_v12  ;;  %v1834_v7 = vadd.f32 %v3854_v15, %v1721_v47  ;;  %v2220_v8 = vmax.f32 %v2184_v27, 0.0  ;;  %v1478_v41 = vmul.f32 %v4084_v10, %v3934_v0  ;;  %v1629_v15 = vld [vmem:[#allocation2 + $0x43] sm:$0xff]  ;;  %v4777_v20 = vld [vmem:[#allocation17_spill] sm:$0xff] }
 0x16b   : > { %v2251_v16 = vmin.f32 %v2215_v3, 6.0  ;;  %v1609_v37 = vadd.f32 %v3994_v14, %v1530_v39  ;;  %2965 = vmatprep.subr.msk.bf16.mxu1 %vm4174_vm4, %v2963_v24  ;;  %v2025_v40 = vadd.f32 %v3912_v11, %v1912_v59  ;;  %v1479_v0 = vmul.f32 %v4084_v10, %v3936_v38  ;;  %v1934_v51 = vld [vmem:[#allocation2 + $0x55] sm:$0xff]  ;;  %v4779_v39 = vld [vmem:[#allocation19_spill] sm:$0xff] }
 0x16c   : > { %v2180_v55 = vadd.f32 %v3847_v22, %v2137_v6  ;;  %v1913_v23 = vadd.f32 %v3909_v53, %v1834_v7  ;;  %v4193_v61 = vmin.f32 %v2220_v8, 6.0  ;;  %v1514_v21 = vadd.f32 %v1478_v41, %v4107_v63  ;;  %v2047_v3 = vld [vmem:[#allocation2 + $0x56] sm:$0xff]  ;;  %v2048_v41 = vld [vmem:[#allocation2 + $0x5e] sm:$0xff] }
 0x16d   : > { %v4773_v53 = vpack.c.bf16 %v3882_v50, %v3895_v32  ;;  %v1722_v28 = vadd.f32 %v4001_v26, %v1609_v37  ;;  %v1557_v11 = vmul.f32 %v4130_v45, %v4181_v36  ;;  %v2138_v30 = vadd.f32 %v3923_v1, %v2025_v40  ;;  %v4217_v1 = vld [vmem:[#allocation2 + $0x5c] sm:$0xff] }
 0x16e   : > { %v2216_v14 = vmax.f32 %v2180_v55, 0.0  ;;  %v2026_v54 = vadd.f32 %v3920_v58, %v1913_v23  ;;  %v1515_v38 = vadd.f32 %v1479_v0, %v1402_v60  ;;  %v1558_v63 = vmul.f32 %v4130_v45, %v4188_v19  ;;  %v4778_v60 = vld [vmem:[#allocation11_spill] sm:$0xff]  ;;  %v1265_v55 = vld [vmem:[#allocation2 + $0xc0] sm:$0xff] }
 0x16f   : > { %2968 = vmatpush3.bf16.xpose.msk.msra.mxu1 %vm4174_vm4, %v4773_v53  ;;  %v1670_v50 = vmul.f32 %v4149_v44, %v1629_v15  ;;  %v1835_v13 = vadd.f32 %v4775_v43, %v1722_v28  ;;  %v1593_v58 = vadd.f32 %v1557_v11, %v1514_v21  ;;  %v2181_v26 = vadd.f32 %v3847_v22, %v2138_v30  ;;  %v1342_v0 = vld [vmem:[#allocation2 + $0xc1] sm:$0xff]  ;;  %v4780_v21 = vld [vmem:[#allocation8_spill] sm:$0xff] }
 0x170   : > { %v2252_v32 = vmin.f32 %v2216_v14, 6.0  ;;  %v2139_v17 = vadd.f32 %v4774_v52, %v2026_v54  ;;  %v1594_v34 = vadd.f32 %v1558_v63, %v1515_v38  ;;  %v1671_v31 = vmul.f32 %v4149_v44, %v1630_v48  ;;  %v4781_v53 = vld [vmem:[#allocation10_spill] sm:$0xff]  ;;  %v1343_v38 = vld [vmem:[#allocation2 + $0xc9] sm:$0xff] }
 0x171   : > { %v1783_v46 = vmul.f32 %v4155_v9, %v4776_v25  ;;  %v1914_v35 = vadd.f32 %v4777_v20, %v1835_v13  ;;  %v1706_v47 = vadd.f32 %v1670_v50, %v1593_v58  ;;  %v2217_v49 = vmax.f32 %v2181_v26, 0.0  ;;  %v4783_v28 = vld [vmem:[#allocation22_spill] sm:$0xff]  ;;  %v1647_v26 = vld [vmem:[#allocation2 + $0xd3] sm:$0xff] }
 0x172   : > { %v2969_v29 = vpack.c.bf16 %v2252_v32, %v2251_v16  ;;  %v2182_v12 = vadd.f32 %v3847_v22, %v2139_v17  ;;  %v1707_v27 = vadd.f32 %v1671_v31, %v1594_v34  ;;  %v1784_v2 = vmul.f32 %v4155_v9, %v4778_v60  ;;  %v1266_v16 = vld [vmem:[#allocation2 + $0xc8] sm:$0xff]  ;;  %v4247_v25 = vld [vmem:[#allocation2 + $0xd2] sm:$0xff] }
 0x173   : > { %v1862_v6 = vmul.f32 %v4112_v42, %v4213_v56  ;;  %v2027_v24 = vadd.f32 %v4779_v39, %v1914_v35  ;;  %v1819_v59 = vadd.f32 %v1783_v46, %v1706_v47  ;;  %v1863_v8 = vmul.f32 %v4112_v42, %v4217_v1  ;;  %v4784_v46 = vld [vmem:[#allocation13_spill] sm:$0xff] }
 0x174   : > { %2971 = vmatprep.subr.msk.bf16.mxu1 %vm4174_vm4, %v2969_v29  ;;  %v2218_v7 = vmax.f32 %v2182_v12, 0.0  ;;  %v2253_v23 = vmin.f32 %v2217_v49, 6.0  ;;  %v1820_v37 = vadd.f32 %v1784_v2, %v1707_v27  ;;  %v1975_v15 = vmul.f32 %v4118_v33, %v1934_v51  ;;  %v4785_v12 = vld [vmem:[#allocation14_spill] sm:$0xff] }
 0x175   : > { %v1976_v40 = vmul.f32 %v4118_v33, %v1935_v4  ;;  %v4782_v14 = vpack.c.bf16 %v4780_v21, %v4781_v53  ;;  %v2140_v11 = vadd.f32 %v4783_v28, %v2027_v24  ;;  %v1898_v48 = vadd.f32 %v1862_v6, %v1819_v59  ;;  %v1648_v35 = vld [vmem:[#allocation2 + $0xdb] sm:$0xff]  ;;  %v2065_v21 = vld [vmem:[#allocation2 + $0xe6] sm:$0xff] }
 0x176   : > { %v2254_v54 = vmin.f32 %v2218_v7, 6.0  ;;  %v2088_v30 = vmul.f32 %v4124_v62, %v2047_v3  ;;  %v1899_v63 = vadd.f32 %v1863_v8, %v1820_v37  ;;  %v2089_v50 = vmul.f32 %v4124_v62, %v2048_v41  ;;  %v4255_v49 = vld [vmem:[#allocation2 + $0xda] sm:$0xff]  ;;  %v1952_v8 = vld [vmem:[#allocation2 + $0xe5] sm:$0xff] }
 0x177   : > { %2974 = vmatpush3.bf16.xpose.msk.msra.mxu1 %vm4174_vm4, %v4782_v14  ;;  %v1306_v32 = vmul.f32 %v4071_v57, %v1265_v55  ;;  %v1307_v52 = vmul.f32 %v4071_v57, %v1266_v16  ;;  %v2183_v43 = vadd.f32 %v3847_v22, %v2140_v11  ;;  %v2011_v13 = vadd.f32 %v1975_v15, %v1898_v48  ;;  %v4265_v16 = vld [vmem:[#allocation2 + $0xe4] sm:$0xff]  ;;  %v4788_v53 = vld [vmem:[#allocation21_spill] sm:$0xff]  ;;  %v4789_v14 = vld [vmem:[#allocation20_spill] sm:$0xff] }
 0x178   : > { %v2975_v17 = vpack.c.bf16 %v2254_v54, %v2253_v23  ;;  %v1383_v58 = vmul.f32 %v4078_v5, %v1342_v0  ;;  %v2012_v34 = vadd.f32 %v1976_v40, %v1899_v63  ;;  %v1384_v31 = vmul.f32 %v4078_v5, %v1343_v38  ;;  %v4786_v23 = vld [vmem:[#allocation15_spill] sm:$0xff]  ;;  %v4787_v15 = vld [vmem:[#allocation18_spill] sm:$0xff] }
 0x179   : > { %v1496_v29 = vmul.f32 %v4084_v10, %v4784_v46  ;;  %v1497_v20 = vmul.f32 %v4084_v10, %v4785_v12  ;;  %v2219_v47 = vmax.f32 %v2183_v43, 0.0  ;;  %v2124_v51 = vadd.f32 %v2088_v30, %v2011_v13  ;;  %v1953_v0 = vld [vmem:[#allocation2 + $0xed] sm:$0xff]  ;;  %v1249_v63 = vld [vmem:[#allocation2 + $0x40] sm:$0xff] }
 0x17a   : > { %2977 = vmatprep.subr.msk.bf16.mxu1 %vm4174_vm4, %v2975_v17  ;;  %v1419_v4 = vadd.f32 %v1383_v58, %v1306_v32  ;;  %v1575_v27 = vmul.f32 %v4130_v45, %v4247_v25  ;;  %v2125_v60 = vadd.f32 %v2089_v50, %v2012_v34  ;;  %v1420_v2 = vadd.f32 %v1384_v31, %v1307_v52  ;;  %v4277_v48 = vld [vmem:[#allocation2 + $0xec] sm:$0xff]  ;;  %v1326_v13 = vld [vmem:[#allocation2 + $0x41] sm:$0xff] }
 0x17b   : > { %v1576_v6 = vmul.f32 %v4130_v45, %v4255_v49  ;;  %v1688_v3 = vmul.f32 %v4149_v44, %v1647_v26  ;;  %v2255_v7 = vmin.f32 %v2219_v47, 6.0  ;;  %v2167_v39 = vadd.f32 %v3847_v22, %v2124_v51  ;;  %v2066_v38 = vld [vmem:[#allocation2 + $0xee] sm:$0xff] }
 0x17c   : > { %v1532_v24 = vadd.f32 %v1496_v29, %v1419_v4  ;;  %v1689_v59 = vmul.f32 %v4149_v44, %v1648_v35  ;;  %v2168_v41 = vadd.f32 %v3847_v22, %v2125_v60  ;;  %v1533_v55 = vadd.f32 %v1497_v20, %v1420_v2  ;;  %v1250_v43 = vld [vmem:[#allocation2 + $0x48] sm:$0xff]  ;;  %v4290_v35 = vld [vmem:[#allocation2 + $0x52] sm:$0xff]  ;;  %v4295_v60 = vld [vmem:[#allocation2 + $0x5a] sm:$0xff] }
 0x17d   : > { %v1801_v37 = vmul.f32 %v4155_v9, %v4786_v23  ;;  %v1802_v40 = vmul.f32 %v4155_v9, %v4787_v15  ;;  %v4790_v54 = vpack.c.bf16 %v4788_v53, %v4789_v14  ;;  %v2981_v28 = vpack.c.bf16 %v4193_v61, %v2255_v7  ;;  %v1327_v58 = vld [vmem:[#allocation2 + $0x49] sm:$0xff]  ;;  %v1631_v2 = vld [vmem:[#allocation2 + $0x53] sm:$0xff] }
 0x17e   : > { %v2203_v22 = vmax.f32 %v2167_v39, 0.0  ;;  %v1611_v11 = vadd.f32 %v1575_v27, %v1532_v24  ;;  %v1880_v30 = vmul.f32 %v4112_v42, %v4265_v16  ;;  %v2204_v50 = vmax.f32 %v2168_v41, 0.0  ;;  %v4303_v23 = vld [vmem:[#allocation2 + $0x64] sm:$0xff] }
 0x17f   : > { %2980 = vmatpush3.bf16.xpose.msk.msra.mxu1 %vm4174_vm4, %v4790_v54  ;;  %v1612_v32 = vadd.f32 %v1576_v6, %v1533_v55  ;;  %v1881_v52 = vmul.f32 %v4112_v42, %v4277_v48  ;;  %v1993_v17 = vmul.f32 %v4118_v33, %v1952_v8  ;;  %v1994_v34 = vmul.f32 %v4118_v33, %v1953_v0  ;;  %v1632_v6 = vld [vmem:[#allocation2 + $0x5b] sm:$0xff] }
 0x180   : > { %2983 = vmatprep.subr.msk.bf16.mxu1 %vm4174_vm4, %v2981_v28  ;;  %v2239_v61 = vmin.f32 %v2203_v22, 6.0  ;;  %v1724_v26 = vadd.f32 %v1688_v3, %v1611_v11  ;;  %v2106_v31 = vmul.f32 %v4124_v62, %v2065_v21  ;;  %v2240_v46 = vmin.f32 %v2204_v50, 6.0  ;;  %v1936_v21 = vld [vmem:[#allocation2 + $0x65] sm:$0xff]  ;;  %v1937_v28 = vld [vmem:[#allocation2 + $0x6d] sm:$0xff] }
 0x181   : > { %v1725_v29 = vadd.f32 %v1689_v59, %v1612_v32  ;;  %v2107_v12 = vmul.f32 %v4124_v62, %v2066_v38  ;;  %v1290_v20 = vmul.f32 %v4071_v57, %v1249_v63  ;;  %v1291_v51 = vmul.f32 %v4071_v57, %v1250_v43  ;;  %v2049_v22 = vld [vmem:[#allocation2 + $0x66] sm:$0xff]  ;;  %v2050_v11 = vld [vmem:[#allocation2 + $0x6e] sm:$0xff] }
 0x182   : > { %v1837_v47 = vadd.f32 %v1801_v37, %v1724_v26  ;;  %v1367_v4 = vmul.f32 %v4078_v5, %v1326_v13  ;;  %v1368_v27 = vmul.f32 %v4078_v5, %v1327_v58  ;;  %v2984_v3 = vpack.c.bf16 %v2240_v46, %v2239_v61  ;;  %v4305_v37 = vld [vmem:[#allocation2 + $0x6c] sm:$0xff]  ;;  %v1345_v61 = vld [vmem:[#allocation2 + $0xd9] sm:$0xff] }
 0x183   : > { %v1838_v7 = vadd.f32 %v1802_v40, %v1725_v29  ;;  %v1480_v39 = vmul.f32 %v4084_v10, %v4181_v36  ;;  %v1481_v24 = vmul.f32 %v4084_v10, %v4188_v19  ;;  %v1559_v55 = vmul.f32 %v4130_v45, %v4290_v35  ;;  %v1267_v32 = vld [vmem:[#allocation2 + $0xd0] sm:$0xff]  ;;  %v4328_v29 = vld [vmem:[%s4734_s5] ss:$0 sm:$0xff] }
 0x184   : > { %v1916_v59 = vadd.f32 %v1880_v30, %v1837_v47  ;;  %v1403_v8 = vadd.f32 %v1367_v4, %v1290_v20  ;;  %v1404_v41 = vadd.f32 %v1368_v27, %v1291_v51  ;;  %v1560_v40 = vmul.f32 %v4130_v45, %v4295_v60  ;;  %v1344_v58 = vld [vmem:[#allocation2 + $0xd1] sm:$0xff] }
 0x185   : > { %v1917_v15 = vadd.f32 %v1881_v52, %v1838_v7  ;;  %v1672_v0 = vmul.f32 %v4149_v44, %v1631_v2  ;;  %v1673_v36 = vmul.f32 %v4149_v44, %v1632_v6  ;;  %v1785_v54 = vmul.f32 %v4155_v9, %v4213_v56  ;;  %v1268_v56 = vld [vmem:[#allocation2 + $0xd8] sm:$0xff] }
 0x186   : > { %v2029_v19 = vadd.f32 %v1993_v17, %v1916_v59  ;;  %v1516_v53 = vadd.f32 %v1480_v39, %v1403_v8  ;;  %v1517_v14 = vadd.f32 %v1481_v24, %v1404_v41  ;;  %v1786_v38 = vmul.f32 %v4155_v9, %v4217_v1  ;;  %v4338_v41 = vld [vmem:[#allocation2 + $0xe2] sm:$0xff] }
 0x187   : > { %2986 = vmatpush3.bf16.xpose.msk.msra.mxu1 %vm4174_vm4, %v2984_v3  ;;  %v2030_v30 = vadd.f32 %v1994_v34, %v1917_v15  ;;  %v1864_v63 = vmul.f32 %v4112_v42, %v4303_v23  ;;  %v1865_v50 = vmul.f32 %v4112_v42, %v4305_v37  ;;  %v1977_v13 = vmul.f32 %v4118_v33, %v1936_v21  ;;  %v1649_v15 = vld [vmem:[#allocation2 + $0xe3] sm:$0xff] }
 0x188   : > { %v2142_v52 = vadd.f32 %v2106_v31, %v2029_v19  ;;  %v1595_v17 = vadd.f32 %v1559_v55, %v1516_v53  ;;  %v1596_v43 = vadd.f32 %v1560_v40, %v1517_v14  ;;  %v1978_v34 = vmul.f32 %v4118_v33, %v1937_v28  ;;  %v1650_v40 = vld [vmem:[#allocation2 + $0xeb] sm:$0xff] }
 0x189   : > { %v2143_v26 = vadd.f32 %v2107_v12, %v2030_v30  ;;  %v2090_v1 = vmul.f32 %v4124_v62, %v2049_v22  ;;  %v2091_v46 = vmul.f32 %v4124_v62, %v2050_v11  ;;  %v1308_v51 = vmul.f32 %v4071_v57, %v1267_v32  ;;  %v4342_v19 = vld [vmem:[#allocation2 + $0xea] sm:$0xff] }
 0x18a   : > { %v2185_v31 = vadd.f32 %v4328_v29, %v2142_v52  ;;  %v1708_v20 = vadd.f32 %v1672_v0, %v1595_v17  ;;  %v1709_v47 = vadd.f32 %v1673_v36, %v1596_v43  ;;  %v1309_v12 = vmul.f32 %v4071_v57, %v1268_v56  ;;  %v4350_v52 = vld [vmem:[#allocation2 + $0xf4] sm:$0xff]  ;;  %v1955_v43 = vld [vmem:[#allocation2 + $0xfd] sm:$0xff] }
 0x18b   : > { %v2186_v4 = vadd.f32 %v4328_v29, %v2143_v26  ;;  %v1385_v27 = vmul.f32 %v4078_v5, %v1344_v58  ;;  %v1386_v2 = vmul.f32 %v4078_v5, %v1345_v61  ;;  %v1498_v39 = vmul.f32 %v4084_v10, %v4247_v25  ;;  %v2067_v56 = vld [vmem:[#allocation2 + $0xf6] sm:$0xff] }
 0x18c   : > { %v2221_v6 = vmax.f32 %v2185_v31, 0.0  ;;  %v1821_v3 = vadd.f32 %v1785_v54, %v1708_v20  ;;  %v1822_v7 = vadd.f32 %v1786_v38, %v1709_v47  ;;  %v1499_v55 = vmul.f32 %v4084_v10, %v4255_v49  ;;  %v1954_v38 = vld [vmem:[#allocation2 + $0xf5] sm:$0xff]  ;;  %v2068_v31 = vld [vmem:[#allocation2 + $0xfe] sm:$0xff] }
 0x18d   : > { %v2222_v24 = vmax.f32 %v2186_v4, 0.0  ;;  %v1421_v59 = vadd.f32 %v1385_v27, %v1308_v51  ;;  %v1422_v8 = vadd.f32 %v1386_v2, %v1309_v12  ;;  %v1577_v53 = vmul.f32 %v4130_v45, %v4338_v41  ;;  %v4354_v26 = vld [vmem:[#allocation2 + $0xfc] sm:$0xff]  ;;  %v1251_v20 = vld [vmem:[#allocation2 + $0x50] sm:$0xff] }
 0x18e   : > { %v2257_v0 = vmin.f32 %v2221_v6, 6.0  ;;  %v1900_v36 = vadd.f32 %v1864_v63, %v1821_v3  ;;  %v1901_v21 = vadd.f32 %v1865_v50, %v1822_v7  ;;  %v1578_v28 = vmul.f32 %v4130_v45, %v4342_v19  ;;  %v1328_v4 = vld [vmem:[#allocation2 + $0x51] sm:$0xff]  ;;  %v1329_v6 = vld [vmem:[#allocation2 + $0x59] sm:$0xff] }
 0x18f   : > { %v2258_v14 = vmin.f32 %v2222_v24, 6.0  ;;  %v1534_v25 = vadd.f32 %v1498_v39, %v1421_v59  ;;  %v1535_v54 = vadd.f32 %v1499_v55, %v1422_v8  ;;  %v1690_v49 = vmul.f32 %v4149_v44, %v1649_v15 }
 0x190   : > { %v2013_v22 = vadd.f32 %v1977_v13, %v1900_v36  ;;  %v2014_v11 = vadd.f32 %v1978_v34, %v1901_v21  ;;  %v1691_v30 = vmul.f32 %v4149_v44, %v1650_v40  ;;  %v1803_v17 = vmul.f32 %v4155_v9, %v4265_v16  ;;  %v4373_v40 = vld [vmem:[#allocation2 + $0x62] sm:$0xff] }
 0x191   : > { %v2987_v63 = vpack.c.bf16 %v2258_v14, %v2257_v0  ;;  %v1613_v50 = vadd.f32 %v1577_v53, %v1534_v25  ;;  %v1614_v32 = vadd.f32 %v1578_v28, %v1535_v54  ;;  %v1804_v13 = vmul.f32 %v4155_v9, %v4277_v48  ;;  %v4376_v53 = vld [vmem:[#allocation2 + $0x6a] sm:$0xff] }
 0x192   : > { %v2126_v58 = vadd.f32 %v2090_v1, %v2013_v22  ;;  %v2127_v61 = vadd.f32 %v2091_v46, %v2014_v11  ;;  %v1882_v34 = vmul.f32 %v4112_v42, %v4350_v52  ;;  %v1883_v16 = vmul.f32 %v4112_v42, %v4354_v26  ;;  %v1252_v46 = vld [vmem:[#allocation2 + $0x58] sm:$0xff]  ;;  %v1633_v25 = vld [vmem:[#allocation2 + $0x63] sm:$0xff] }
 0x193   : > { %2989 = vmatprep.subr.msk.bf16.mxu1 %vm4174_vm4, %v2987_v63  ;;  %v1726_v47 = vadd.f32 %v1690_v49, %v1613_v50  ;;  %v1727_v51 = vadd.f32 %v1691_v30, %v1614_v32  ;;  %v1995_v1 = vmul.f32 %v4118_v33, %v1954_v38  ;;  %v1996_v27 = vmul.f32 %v4118_v33, %v1955_v43  ;;  %v1634_v49 = vld [vmem:[#allocation2 + $0x6b] sm:$0xff]  ;;  %v4384_v32 = vld [vmem:[#allocation2 + $0x74] sm:$0xff] }
 0x194   : > { %v2169_v12 = vadd.f32 %v4328_v29, %v2126_v58  ;;  %v2170_v48 = vadd.f32 %v4328_v29, %v2127_v61  ;;  %v2108_v2 = vmul.f32 %v4124_v62, %v2067_v56  ;;  %v2109_v39 = vmul.f32 %v4124_v62, %v2068_v31  ;;  %v4389_v58 = vld [vmem:[#allocation2 + $0x7c] sm:$0xff] }
 0x195   : > { %v1839_v3 = vadd.f32 %v1803_v17, %v1726_v47  ;;  %v1840_v7 = vadd.f32 %v1804_v13, %v1727_v51  ;;  %v1292_v24 = vmul.f32 %v4071_v57, %v1251_v20  ;;  %v1293_v55 = vmul.f32 %v4071_v57, %v1252_v46  ;;  %v1938_v31 = vld [vmem:[#allocation2 + $0x75] sm:$0xff]  ;;  %v1939_v20 = vld [vmem:[#allocation2 + $0x7d] sm:$0xff] }
 0x196   : > { %v2205_v59 = vmax.f32 %v2169_v12, 0.0  ;;  %v2206_v8 = vmax.f32 %v2170_v48, 0.0  ;;  %v1369_v15 = vmul.f32 %v4078_v5, %v1328_v4  ;;  %v1370_v21 = vmul.f32 %v4078_v5, %v1329_v6  ;;  %v2051_v47 = vld [vmem:[#allocation2 + $0x76] sm:$0xff]  ;;  %v2052_v4 = vld [vmem:[#allocation2 + $0x7e] sm:$0xff] }
 0x197   : > { %v1918_v0 = vadd.f32 %v1882_v34, %v1839_v3  ;;  %v1919_v36 = vadd.f32 %v1883_v16, %v1840_v7  ;;  %v1482_v14 = vmul.f32 %v4084_v10, %v4290_v35  ;;  %v1483_v11 = vmul.f32 %v4084_v10, %v4295_v60  ;;  %v1269_v6 = vld [vmem:[#allocation2 + $0xe0] sm:$0xff]  ;;  %v1270_v3 = vld [vmem:[#allocation2 + $0xe8] sm:$0xff] }
 0x198   : > { %v2241_v54 = vmin.f32 %v2205_v59, 6.0  ;;  %v2242_v28 = vmin.f32 %v2206_v8, 6.0  ;;  %v1405_v22 = vadd.f32 %v1369_v15, %v1292_v24  ;;  %v1406_v63 = vadd.f32 %v1370_v21, %v1293_v55  ;;  %v1346_v7 = vld [vmem:[#allocation2 + $0xe1] sm:$0xff]  ;;  %v1347_v59 = vld [vmem:[#allocation2 + $0xe9] sm:$0xff] }
 0x199   : > { %v2031_v30 = vadd.f32 %v1995_v1, %v1918_v0  ;;  %v2032_v38 = vadd.f32 %v1996_v27, %v1919_v36  ;;  %v1561_v50 = vmul.f32 %v4130_v45, %v4373_v40  ;;  %v1562_v35 = vmul.f32 %v4130_v45, %v4376_v53 }
 0x19a   : > { %v2990_v17 = vpack.c.bf16 %v2242_v28, %v2241_v54  ;;  %v1518_v43 = vadd.f32 %v1482_v14, %v1405_v22  ;;  %v1674_v56 = vmul.f32 %v4149_v44, %v1633_v25  ;;  %v1519_v13 = vadd.f32 %v1483_v11, %v1406_v63  ;;  %v4412_v63 = vld [vmem:[#allocation2 + $0xf2] sm:$0xff] }
 0x19b   : > { %v2144_v61 = vadd.f32 %v2108_v2, %v2031_v30  ;;  %v2145_v60 = vadd.f32 %v2109_v39, %v2032_v38  ;;  %v1675_v34 = vmul.f32 %v4149_v44, %v1634_v49  ;;  %v1787_v16 = vmul.f32 %v4155_v9, %v4303_v23  ;;  %v1651_v49 = vld [vmem:[#allocation2 + $0xf3] sm:$0xff] }
 0x19c   : > { %2992 = vmatpush3.bf16.xpose.msk.msra.mxu1 %vm4174_vm4, %v2990_v17  ;;  %v1597_v51 = vadd.f32 %v1561_v50, %v1518_v43  ;;  %v1788_v1 = vmul.f32 %v4155_v9, %v4305_v37  ;;  %v1866_v46 = vmul.f32 %v4112_v42, %v4384_v32  ;;  %v1598_v27 = vadd.f32 %v1562_v35, %v1519_v13  ;;  %v1652_v43 = vld [vmem:[#allocation2 + $0xfb] sm:$0xff] }
 0x19d   : > { %v2187_v12 = vadd.f32 %v4328_v29, %v2144_v61  ;;  %v2188_v48 = vadd.f32 %v4328_v29, %v2145_v60  ;;  %v1867_v2 = vmul.f32 %v4112_v42, %v4389_v58  ;;  %v1979_v23 = vmul.f32 %v4118_v33, %v1938_v31  ;;  %v4418_v60 = vld [vmem:[#allocation2 + $0xfa] sm:$0xff] }
 0x19e   : > { %v1710_v39 = vadd.f32 %v1674_v56, %v1597_v51  ;;  %v1980_v37 = vmul.f32 %v4118_v33, %v1939_v20  ;;  %v2092_v24 = vmul.f32 %v4124_v62, %v2051_v47  ;;  %v1711_v15 = vadd.f32 %v1675_v34, %v1598_v27 }
 0x19f   : > { %v2223_v8 = vmax.f32 %v2187_v12, 0.0  ;;  %v2224_v55 = vmax.f32 %v2188_v48, 0.0  ;;  %v2093_v0 = vmul.f32 %v4124_v62, %v2052_v4  ;;  %v1310_v21 = vmul.f32 %v4071_v57, %v1269_v6  ;;  %v1957_v4 = vld [vmem:[#allocation2 + $0x10d] sm:$0xff] }
 0x1a0   : > { %v1823_v36 = vadd.f32 %v1787_v16, %v1710_v39  ;;  %v1311_v14 = vmul.f32 %v4071_v57, %v1270_v3  ;;  %v1387_v25 = vmul.f32 %v4078_v5, %v1346_v7  ;;  %v1824_v22 = vadd.f32 %v1788_v1, %v1711_v15  ;;  %v4428_v1 = vld [vmem:[#allocation2 + $0x104] sm:$0xff]  ;;  %v2070_v7 = vld [vmem:[#allocation2 + $0x10e] sm:$0xff] }
 0x1a1   : > { %v2259_v54 = vmin.f32 %v2223_v8, 6.0  ;;  %v2260_v28 = vmin.f32 %v2224_v55, 6.0  ;;  %v1388_v11 = vmul.f32 %v4078_v5, %v1347_v59  ;;  %v1500_v50 = vmul.f32 %v4084_v10, %v4338_v41  ;;  %v1956_v41 = vld [vmem:[#allocation2 + $0x105] sm:$0xff] }
 0x1a2   : > { %v1902_v30 = vadd.f32 %v1866_v46, %v1823_v36  ;;  %v1423_v38 = vadd.f32 %v1387_v25, %v1310_v21  ;;  %v1501_v17 = vmul.f32 %v4084_v10, %v4342_v19  ;;  %v1903_v56 = vadd.f32 %v1867_v2, %v1824_v22  ;;  %v2069_v12 = vld [vmem:[#allocation2 + $0x106] sm:$0xff] }
 0x1a3   : > { %v2993_v35 = vpack.c.bf16 %v2260_v28, %v2259_v54  ;;  %v1424_v61 = vadd.f32 %v1388_v11, %v1311_v14  ;;  %v1579_v13 = vmul.f32 %v4130_v45, %v4412_v63  ;;  %v1580_v20 = vmul.f32 %v4130_v45, %v4418_v60  ;;  %v4432_v2 = vld [vmem:[#allocation2 + $0x10c] sm:$0xff]  ;;  %v1253_v39 = vld [vmem:[#allocation2 + $0x60] sm:$0xff] }
 0x1a4   : > { %v2015_v34 = vadd.f32 %v1979_v23, %v1902_v30  ;;  %v1536_v31 = vadd.f32 %v1500_v50, %v1423_v38  ;;  %v1692_v47 = vmul.f32 %v4149_v44, %v1651_v49  ;;  %v2016_v19 = vadd.f32 %v1980_v37, %v1903_v56  ;;  %v1254_v8 = vld [vmem:[#allocation2 + $0x68] sm:$0xff]  ;;  %v4449_v30 = vld [vmem:[#allocation2 + $0x72] sm:$0xff] }
 0x1a5   : > { %2995 = vmatprep.subr.msk.bf16.mxu1 %vm4174_vm4, %v2993_v35  ;;  %v1537_v51 = vadd.f32 %v1501_v17, %v1424_v61  ;;  %v1693_v16 = vmul.f32 %v4149_v44, %v1652_v43  ;;  %v1805_v46 = vmul.f32 %v4155_v9, %v4350_v52  ;;  %v1806_v6 = vmul.f32 %v4155_v9, %v4354_v26  ;;  %v1331_v21 = vld [vmem:[#allocation2 + $0x69] sm:$0xff]  ;;  %v4452_v43 = vld [vmem:[#allocation2 + $0x7a] sm:$0xff] }
 0x1a6   : > { %v2128_v48 = vadd.f32 %v2092_v24, %v2015_v34  ;;  %v1615_v27 = vadd.f32 %v1579_v13, %v1536_v31  ;;  %v1884_v3 = vmul.f32 %v4112_v42, %v4428_v1  ;;  %v2129_v23 = vadd.f32 %v2093_v0, %v2016_v19  ;;  %v1330_v24 = vld [vmem:[#allocation2 + $0x61] sm:$0xff]  ;;  %v1635_v56 = vld [vmem:[#allocation2 + $0x73] sm:$0xff] }
 0x1a7   : > { %v1616_v37 = vadd.f32 %v1580_v20, %v1537_v51  ;;  %v1885_v59 = vmul.f32 %v4112_v42, %v4432_v2  ;;  %v1997_v52 = vmul.f32 %v4118_v33, %v1956_v41  ;;  %v1998_v36 = vmul.f32 %v4118_v33, %v1957_v4  ;;  %v1636_v31 = vld [vmem:[#allocation2 + $0x7b] sm:$0xff]  ;;  %v4465_v4 = vld [vmem:[#allocation2 + $0x8c] sm:$0xff] }
 0x1a8   : > { %v2171_v55 = vadd.f32 %v4328_v29, %v2128_v48  ;;  %v1728_v15 = vadd.f32 %v1692_v47, %v1615_v27  ;;  %v2110_v26 = vmul.f32 %v4124_v62, %v2069_v12  ;;  %v2172_v14 = vadd.f32 %v4328_v29, %v2129_v23  ;;  %v1940_v27 = vld [vmem:[#allocation2 + $0x85] sm:$0xff] }
 0x1a9   : > { %v1729_v25 = vadd.f32 %v1693_v16, %v1616_v37  ;;  %v2111_v0 = vmul.f32 %v4124_v62, %v2070_v7  ;;  %v1294_v54 = vmul.f32 %v4071_v57, %v1253_v39  ;;  %v1295_v11 = vmul.f32 %v4071_v57, %v1254_v8  ;;  %v2053_v37 = vld [vmem:[#allocation2 + $0x86] sm:$0xff] }
 0x1aa   : > { %v2207_v28 = vmax.f32 %v2171_v55, 0.0  ;;  %v1841_v22 = vadd.f32 %v1805_v46, %v1728_v15  ;;  %v1371_v49 = vmul.f32 %v4078_v5, %v1330_v24  ;;  %v2208_v38 = vmax.f32 %v2172_v14, 0.0  ;;  %v4463_v46 = vld [vmem:[#allocation2 + $0x84] sm:$0xff]  ;;  %v1271_v15 = vld [vmem:[#allocation2 + $0xf0] sm:$0xff] }
 0x1ab   : > { %v1842_v50 = vadd.f32 %v1806_v6, %v1729_v25  ;;  %v1372_v17 = vmul.f32 %v4078_v5, %v1331_v21  ;;  %v1484_v35 = vmul.f32 %v4084_v10, %v4373_v40  ;;  %v1485_v57 = vmul.f32 %v4084_v10, %v4376_v53  ;;  %v1941_v6 = vld [vmem:[#allocation2 + $0x8d] sm:$0xff]  ;;  %v1273_v14 = vld [vmem:[#allocation2 + $0x100] sm:$0xff] }
 0x1ac   : > { %v2243_v61 = vmin.f32 %v2207_v28, 6.0  ;;  %v1920_v13 = vadd.f32 %v1884_v3, %v1841_v22  ;;  %v1407_v34 = vadd.f32 %v1371_v49, %v1294_v54  ;;  %v2244_v20 = vmin.f32 %v2208_v38, 6.0  ;;  %v1274_v25 = vld [vmem:[#allocation2 + $0x108] sm:$0xff] }
 0x1ad   : > { %v1921_v47 = vadd.f32 %v1885_v59, %v1842_v50  ;;  %v1408_v41 = vadd.f32 %v1372_v17, %v1295_v11  ;;  %v1563_v19 = vmul.f32 %v4130_v45, %v4449_v30  ;;  %v1564_v16 = vmul.f32 %v4130_v45, %v4452_v43  ;;  %v2054_v59 = vld [vmem:[#allocation2 + $0x8e] sm:$0xff]  ;;  %v4487_v50 = vld [vmem:[%s4733_s4] ss:$0 sm:$0xff] }
 0x1ae   : > { %v2033_v5 = vadd.f32 %v1997_v52, %v1920_v13  ;;  %v1520_v51 = vadd.f32 %v1484_v35, %v1407_v34  ;;  %v1676_v40 = vmul.f32 %v4149_v44, %v1635_v56  ;;  %v2996_v12 = vpack.c.bf16 %v2244_v20, %v2243_v61  ;;  %v1348_v11 = vld [vmem:[#allocation2 + $0xf1] sm:$0xff]  ;;  %v1350_v35 = vld [vmem:[#allocation2 + $0x101] sm:$0xff]  ;;  %v1351_v56 = vld [vmem:[#allocation2 + $0x109] sm:$0xff] }
 0x1af   : > { %v2034_v10 = vadd.f32 %v1998_v36, %v1921_v47  ;;  %v1521_v53 = vadd.f32 %v1485_v57, %v1408_v41  ;;  %v1677_v48 = vmul.f32 %v4149_v44, %v1636_v31  ;;  %v1789_v39 = vmul.f32 %v4155_v9, %v4384_v32  ;;  %v1272_v36 = vld [vmem:[#allocation2 + $0xf8] sm:$0xff]  ;;  %v4496_v20 = vld [vmem:[%s4733_s4 + $0x1] ss:$0 sm:$0xff] }
 0x1b0   : > { %v2146_v3 = vadd.f32 %v2110_v26, %v2033_v5  ;;  %v1599_v7 = vadd.f32 %v1563_v19, %v1520_v51  ;;  %v1790_v23 = vmul.f32 %v4155_v9, %v4389_v58  ;;  %2998 = vmatpush3.bf16.xpose.msk.msra.mxu1 %vm4174_vm4, %v2996_v12  ;;  %v1868_v24 = vmul.f32 %v4112_v42, %v4463_v46  ;;  %v1464_v12 = vld [vmem:[#allocation2 + $0x10a] sm:$0xff] }
 0x1b1   : > { %v2147_v52 = vadd.f32 %v2111_v0, %v2034_v10  ;;  %v1600_v8 = vadd.f32 %v1564_v16, %v1521_v53  ;;  %v1869_v55 = vmul.f32 %v4112_v42, %v4465_v4  ;;  %v1981_v58 = vmul.f32 %v4118_v33, %v1940_v27  ;;  %v1349_v42 = vld [vmem:[#allocation2 + $0xf9] sm:$0xff]  ;;  %v4505_v27 = vld [vmem:[%s4733_s4 + $0x2] ss:$0 sm:$0xff] }
 0x1b2   : > { %v2189_v32 = vadd.f32 %v4328_v29, %v2146_v3  ;;  %v1712_v26 = vadd.f32 %v1676_v40, %v1599_v7  ;;  %v1982_v21 = vmul.f32 %v4118_v33, %v1941_v6  ;;  %v2094_v28 = vmul.f32 %v4124_v62, %v2053_v37  ;;  %v1463_v40 = vld [vmem:[#allocation2 + $0x102] sm:$0xff] }
 0x1b3   : > { %v2190_v0 = vadd.f32 %v4328_v29, %v2147_v52  ;;  %v1713_v54 = vadd.f32 %v1677_v48, %v1600_v8  ;;  %v2095_v22 = vmul.f32 %v4124_v62, %v2054_v59  ;;  %v1312_v33 = vmul.f32 %v4487_v50, %v1271_v15  ;;  %v4509_v59 = vld [vmem:[#allocation2 + $0x112] sm:$0xff] }
 0x1b4   : > { %v2225_v49 = vmax.f32 %v2189_v32, 0.0  ;;  %v1825_v38 = vadd.f32 %v1789_v39, %v1712_v26  ;;  %v1313_v17 = vmul.f32 %v4487_v50, %v1272_v36  ;;  %v1314_v34 = vmul.f32 %v4487_v50, %v1273_v14  ;;  %v4520_v36 = vld [vmem:[#allocation2 + $0x11a] sm:$0xff]  ;;  %v1653_v26 = vld [vmem:[#allocation2 + $0x103] sm:$0xff] }
 0x1b5   : > { %v2226_v61 = vmax.f32 %v2190_v0, 0.0  ;;  %v1826_v13 = vadd.f32 %v1790_v23, %v1713_v54  ;;  %v1315_v62 = vmul.f32 %v4487_v50, %v1274_v25  ;;  %v1389_v47 = vmul.f32 %v4496_v20, %v1348_v11 }
 0x1b6   : > { %v2261_v57 = vmin.f32 %v2225_v49, 6.0  ;;  %v1904_v31 = vadd.f32 %v1868_v24, %v1825_v38  ;;  %v1390_v41 = vmul.f32 %v4496_v20, %v1349_v42  ;;  %v1391_v51 = vmul.f32 %v4496_v20, %v1350_v35  ;;  %v1655_v42 = vld [vmem:[#allocation2 + $0x113] sm:$0xff]  ;;  %v1656_v49 = vld [vmem:[#allocation2 + $0x11b] sm:$0xff] }
 0x1b7   : > { %v2262_v19 = vmin.f32 %v2226_v61, 6.0  ;;  %v1905_v5 = vadd.f32 %v1869_v55, %v1826_v13  ;;  %v1392_v16 = vmul.f32 %v4496_v20, %v1351_v56  ;;  %v1425_v53 = vadd.f32 %v1389_v47, %v1312_v33  ;;  %v3100_v55 = vld [vmem:[#allocation2 + $0x82] sm:$0xff] }
 0x1b8   : > { %v2017_v10 = vadd.f32 %v1981_v58, %v1904_v31  ;;  %v1426_v48 = vadd.f32 %v1390_v41, %v1313_v17  ;;  %v1502_v6 = vmul.f32 %v4505_v27, %v4412_v63  ;;  %v1427_v39 = vadd.f32 %v1391_v51, %v1314_v34  ;;  %v1654_v58 = vld [vmem:[#allocation2 + $0x10b] sm:$0xff]  ;;  %v1958_v51 = vld [vmem:[#allocation2 + $0x115] sm:$0xff] }
 0x1b9   : > { %v2999_v3 = vpack.c.bf16 %v2262_v19, %v2261_v57  ;;  %v2018_v7 = vadd.f32 %v1982_v21, %v1905_v5  ;;  %v1428_v23 = vadd.f32 %v1392_v16, %v1315_v62  ;;  %v1503_v52 = vmul.f32 %v4505_v27, %v4418_v60  ;;  %v3102_v16 = vld [vmem:[#allocation2 + $0x8a] sm:$0xff] }
 0x1ba   : > { %v2130_v37 = vadd.f32 %v2094_v28, %v2017_v10  ;;  %v1504_v8 = vmul.f32 %v4505_v27, %v1463_v40  ;;  %v1505_v24 = vmul.f32 %v4505_v27, %v1464_v12  ;;  %v4516_v15 = vmul.f32 %v3100_v55, %v4130_v45  ;;  %v4528_v28 = vld [vmem:[%s4733_s4 + $0x3] ss:$0 sm:$0xff]  ;;  %v3104_v10 = vld [vmem:[#allocation2 + $0x94] sm:$0xff] }
 0x1bb   : > { %3001 = vmatprep.subr.msk.bf16.mxu1 %vm4174_vm4, %v2999_v3  ;;  %v2131_v63 = vadd.f32 %v2095_v22, %v2018_v7  ;;  %v1538_v32 = vadd.f32 %v1502_v6, %v1425_v53  ;;  %v1539_v60 = vadd.f32 %v1503_v52, %v1426_v48  ;;  %v1581_v54 = vmul.f32 %v4130_v45, %v1463_v40  ;;  %v1768_v6 = vld [vmem:[#allocation2 + $0x114] sm:$0xff]  ;;  %v1959_v3 = vld [vmem:[#allocation2 + $0x11d] sm:$0xff] }
 0x1bc   : > { %v2173_v21 = vadd.f32 %v4328_v29, %v2130_v37  ;;  %v1540_v14 = vadd.f32 %v1504_v8, %v1427_v39  ;;  %v1541_v25 = vadd.f32 %v1505_v24, %v1428_v23  ;;  %v1582_v22 = vmul.f32 %v4528_v28, %v1464_v12  ;;  %v4547_v12 = vld [vmem:[%s4733_s4 + $0x6] ss:$0 sm:$0xff]  ;;  %v2071_v7 = vld [vmem:[#allocation2 + $0x116] sm:$0xff]  ;;  %v2072_v24 = vld [vmem:[#allocation2 + $0x11e] sm:$0xff] }
 0x1bd   : > { %v2174_v0 = vadd.f32 %v4328_v29, %v2131_v63  ;;  %v1583_v11 = vmul.f32 %v4528_v28, %v4509_v59  ;;  %v1584_v33 = vmul.f32 %v4528_v28, %v4520_v36  ;;  %v1694_v17 = vmul.f32 %v4149_v44, %v1653_v26  ;;  %v1769_v37 = vld [vmem:[#allocation2 + $0x11c] sm:$0xff]  ;;  %v1255_v55 = vld [vmem:[#allocation2 + $0x70] sm:$0xff] }
 0x1be   : > { %v2209_v38 = vmax.f32 %v2173_v21, 0.0  ;;  %v1695_v45 = vmul.f32 %v4149_v44, %v1654_v58  ;;  %v1617_v56 = vadd.f32 %v1581_v54, %v1538_v32  ;;  %v1618_v61 = vadd.f32 %v1582_v22, %v1539_v60  ;;  %v4562_v58 = vld [vmem:[%s4733_s4 + $0x7] ss:$0 sm:$0xff]  ;;  %v1332_v21 = vld [vmem:[#allocation2 + $0x71] sm:$0xff]  ;;  %v1333_v60 = vld [vmem:[#allocation2 + $0x79] sm:$0xff] }
 0x1bf   : > { %v2210_v35 = vmax.f32 %v2174_v0, 0.0  ;;  %v1619_v13 = vadd.f32 %v1583_v11, %v1540_v14  ;;  %v1620_v62 = vadd.f32 %v1584_v33, %v1541_v25  ;;  %v1696_v57 = vmul.f32 %v4149_v44, %v1655_v42  ;;  %v4570_v14 = vld [vmem:[%s4733_s4 + $0x5] ss:$0 sm:$0xff]  ;;  %v4577_v22 = vld [vmem:[%s4733_s4 + $0x8] ss:$0 sm:$0xff] }
 0x1c0   : > { %v2245_v34 = vmin.f32 %v2209_v38, 6.0  ;;  %v1697_v31 = vmul.f32 %v4149_v44, %v1656_v49  ;;  %v1730_v41 = vadd.f32 %v1694_v17, %v1617_v56  ;;  %v1731_v19 = vadd.f32 %v1695_v45, %v1618_v61  ;;  %v3105_v44 = vld [vmem:[#allocation2 + $0x9c] sm:$0xff] }
 0x1c1   : > { %v2246_v47 = vmin.f32 %v2210_v35, 6.0  ;;  %v1807_v5 = vmul.f32 %v4155_v9, %v4428_v1  ;;  %v4542_v40 = vmul.f32 %v3102_v16, %v4528_v28  ;;  %v4550_v53 = vmul.f32 %v3104_v10, %v4547_v12  ;;  %v1637_v61 = vld [vmem:[#allocation2 + $0x83] sm:$0xff] }
 0x1c2   : > { %v4553_v48 = vmul.f32 %v3105_v44, %v4547_v12  ;;  %v1808_v1 = vmul.f32 %v4155_v9, %v4432_v2  ;;  %v1732_v23 = vadd.f32 %v1696_v57, %v1619_v13  ;;  %v1886_v8 = vmul.f32 %v4547_v12, %v1768_v6  ;;  %v1256_v2 = vld [vmem:[#allocation2 + $0x78] sm:$0xff] }
 0x1c3   : > { %v3002_v39 = vpack.c.bf16 %v2246_v47, %v2245_v34  ;;  %v1843_v52 = vadd.f32 %v1807_v5, %v1730_v41  ;;  %v1733_v63 = vadd.f32 %v1697_v31, %v1620_v62  ;;  %v1887_v26 = vmul.f32 %v4547_v12, %v1769_v37  ;;  %v1638_v31 = vld [vmem:[#allocation2 + $0x8b] sm:$0xff] }
 0x1c4   : > { %v1844_v32 = vadd.f32 %v1808_v1, %v1731_v19  ;;  %v1999_v9 = vmul.f32 %v4562_v58, %v1958_v51  ;;  %v1809_v25 = vmul.f32 %v4570_v14, %v1768_v6  ;;  %v2000_v54 = vmul.f32 %v4562_v58, %v1959_v3  ;;  %v4598_v51 = vld [vmem:[#allocation2 + $0x124] sm:$0xff] }
 0x1c5   : > { %3004 = vmatpush3.bf16.xpose.msk.msra.mxu1 %vm4174_vm4, %v3002_v39  ;;  %v1922_v0 = vadd.f32 %v1886_v8, %v1843_v52  ;;  %v2112_v11 = vmul.f32 %v4577_v22, %v2071_v7  ;;  %v1810_v42 = vmul.f32 %v4570_v14, %v1769_v37  ;;  %v2113_v38 = vmul.f32 %v4577_v22, %v2072_v24  ;;  %v1961_v7 = vld [vmem:[#allocation2 + $0x12d] sm:$0xff] }
 0x1c6   : > { %v1923_v49 = vadd.f32 %v1887_v26, %v1844_v32  ;;  %v1296_v33 = vmul.f32 %v4487_v50, %v1255_v55  ;;  %v1297_v45 = vmul.f32 %v4487_v50, %v1256_v2  ;;  %v1373_v35 = vmul.f32 %v4496_v20, %v1332_v21  ;;  %v2073_v26 = vld [vmem:[#allocation2 + $0x126] sm:$0xff] }
 0x1c7   : > { %v2035_v17 = vadd.f32 %v1999_v9, %v1922_v0  ;;  %v1374_v56 = vmul.f32 %v4496_v20, %v1333_v60  ;;  %v4588_v13 = vmul.f32 %v4505_v27, %v4509_v59  ;;  %v4592_v34 = vmul.f32 %v4505_v27, %v4520_v36  ;;  %v4603_v36 = vld [vmem:[%s4733_s4 + $0x4] ss:$0 sm:$0xff]  ;;  %v1275_v60 = vld [vmem:[#allocation2 + $0x110] sm:$0xff] }
 0x1c8   : > { %v2036_v62 = vadd.f32 %v2000_v54, %v1923_v49  ;;  %v1486_v57 = vmul.f32 %v4505_v27, %v4449_v30  ;;  %v1409_v41 = vadd.f32 %v1373_v35, %v1296_v33  ;;  %v1487_v5 = vmul.f32 %v4505_v27, %v4452_v43  ;;  %v4606_v30 = vld [vmem:[#allocation2 + $0x12c] sm:$0xff]  ;;  %v1943_v49 = vld [vmem:[#allocation2 + $0x9d] sm:$0xff] }
 0x1c9   : > { %v2148_v47 = vadd.f32 %v2112_v11, %v2035_v17  ;;  %v1410_v19 = vadd.f32 %v1374_v56, %v1297_v45  ;;  %v1845_v16 = vadd.f32 %v1809_v25, %v1732_v23  ;;  %v1846_v59 = vadd.f32 %v1810_v42, %v1733_v63  ;;  %v1960_v27 = vld [vmem:[#allocation2 + $0x125] sm:$0xff]  ;;  %v1942_v63 = vld [vmem:[#allocation2 + $0x95] sm:$0xff] }
 0x1ca   : > { %v2149_v10 = vadd.f32 %v2113_v38, %v2036_v62  ;;  %v1678_v44 = vmul.f32 %v4603_v36, %v1637_v61  ;;  %v1522_v1 = vadd.f32 %v1486_v57, %v1409_v41  ;;  %v1679_v43 = vmul.f32 %v4603_v36, %v1638_v31  ;;  %v1352_v42 = vld [vmem:[#allocation2 + $0x111] sm:$0xff]  ;;  %v1353_v45 = vld [vmem:[#allocation2 + $0x119] sm:$0xff] }
 0x1cb   : > { %v2191_v6 = vadd.f32 %v4328_v29, %v2148_v47  ;;  %v1523_v3 = vadd.f32 %v1487_v5, %v1410_v19  ;;  %v1791_v23 = vmul.f32 %v4570_v14, %v4463_v46  ;;  %v1792_v37 = vmul.f32 %v4570_v14, %v4465_v4  ;;  %v2074_v4 = vld [vmem:[#allocation2 + $0x12e] sm:$0xff]  ;;  %v2055_v61 = vld [vmem:[#allocation2 + $0x96] sm:$0xff]  ;;  %v2056_v62 = vld [vmem:[#allocation2 + $0x9e] sm:$0xff] }
 0x1cc   : > { %v2192_v39 = vadd.f32 %v4328_v29, %v2149_v10  ;;  %v1888_v52 = vmul.f32 %v4547_v12, %v4598_v51  ;;  %v1601_v24 = vadd.f32 %v4516_v15, %v1522_v1  ;;  %v1889_v32 = vmul.f32 %v4547_v12, %v4606_v30  ;;  %v1276_v15 = vld [vmem:[#allocation2 + $0x118] sm:$0xff]  ;;  %v1544_v47 = vld [vmem:[#allocation2 + $0x122] sm:$0xff] }
 0x1cd   : > { %v2227_v8 = vmax.f32 %v2191_v6, 0.0  ;;  %v1602_v55 = vadd.f32 %v4542_v40, %v1523_v3  ;;  %v2001_v46 = vmul.f32 %v4562_v58, %v1960_v27  ;;  %v2002_v21 = vmul.f32 %v4562_v58, %v1961_v7  ;;  %v1657_v3 = vld [vmem:[#allocation2 + $0x123] sm:$0xff] }
 0x1ce   : > { %v2228_v9 = vmax.f32 %v2192_v39, 0.0  ;;  %v1924_v2 = vadd.f32 %v1888_v52, %v1845_v16  ;;  %v1714_v0 = vadd.f32 %v1678_v44, %v1601_v24  ;;  %v1925_v11 = vadd.f32 %v1889_v32, %v1846_v59  ;;  %v1545_v59 = vld [vmem:[#allocation2 + $0x12a] sm:$0xff] }
 0x1cf   : > { %v2263_v25 = vmin.f32 %v2227_v8, 6.0  ;;  %v1715_v54 = vadd.f32 %v1679_v43, %v1602_v55  ;;  %v1983_v38 = vmul.f32 %v4562_v58, %v1942_v63  ;;  %v2114_v17 = vmul.f32 %v4577_v22, %v2073_v26  ;;  %v1658_v39 = vld [vmem:[#allocation2 + $0x12b] sm:$0xff] }
 0x1d0   : > { %v2264_v40 = vmin.f32 %v2228_v9, 6.0  ;;  %v2037_v33 = vadd.f32 %v2001_v46, %v1924_v2  ;;  %v1827_v35 = vadd.f32 %v1791_v23, %v1714_v0  ;;  %v2115_v57 = vmul.f32 %v4577_v22, %v2074_v4  ;;  %v1849_v9 = vld [vmem:[#allocation2 + $0x134] sm:$0xff] }
 0x1d1   : > { %v1828_v56 = vadd.f32 %v1792_v37, %v1715_v54  ;;  %v1316_v31 = vmul.f32 %v4487_v50, %v1275_v60  ;;  %v2038_v19 = vadd.f32 %v2002_v21, %v1925_v11  ;;  %v1317_v5 = vmul.f32 %v4487_v50, %v1276_v15  ;;  %v1850_v21 = vld [vmem:[#allocation2 + $0x13c] sm:$0xff] }
 0x1d2   : > { %v3005_v41 = vpack.c.bf16 %v2264_v40, %v2263_v25  ;;  %v1393_v16 = vmul.f32 %v4496_v20, %v1352_v42  ;;  %v1906_v10 = vadd.f32 %v4550_v53, %v1827_v35  ;;  %v1984_v6 = vmul.f32 %v4562_v58, %v1943_v49  ;;  %v1962_v25 = vld [vmem:[#allocation2 + $0x135] sm:$0xff]  ;;  %v1963_v49 = vld [vmem:[#allocation2 + $0x13d] sm:$0xff] }
 0x1d3   : > { %v1907_v44 = vadd.f32 %v4553_v48, %v1828_v56  ;;  %v1394_v1 = vmul.f32 %v4496_v20, %v1353_v45  ;;  %v2096_v43 = vmul.f32 %v4577_v22, %v2055_v61  ;;  %v2097_v27 = vmul.f32 %v4577_v22, %v2056_v62  ;;  %v2076_v56 = vld [vmem:[#allocation2 + $0x13e] sm:$0xff] }
 0x1d4   : > { %3007 = vmatprep.subr.msk.bf16.mxu1 %vm4174_vm4, %v3005_v41  ;;  %v1429_v50 = vadd.f32 %v1393_v16, %v1316_v31  ;;  %v1585_v7 = vmul.f32 %v4528_v28, %v1544_v47  ;;  %v2019_v23 = vadd.f32 %v1983_v38, %v1906_v10  ;;  %v1586_v48 = vmul.f32 %v4528_v28, %v1545_v59 }
 0x1d5   : > { %v2020_v53 = vadd.f32 %v1984_v6, %v1907_v44  ;;  %v1430_v37 = vadd.f32 %v1394_v1, %v1317_v5  ;;  %v2150_v52 = vadd.f32 %v2114_v17, %v2037_v33  ;;  %v2151_v8 = vadd.f32 %v2115_v57, %v2038_v19 }
 0x1d6   : > { %v1542_v20 = vadd.f32 %v4588_v13, %v1429_v50  ;;  %v1698_v24 = vmul.f32 %v4603_v36, %v1657_v3  ;;  %v2132_v55 = vadd.f32 %v2096_v43, %v2019_v23  ;;  %v1699_v26 = vmul.f32 %v4603_v36, %v1658_v39  ;;  %v3110_v43 = vld [vmem:[%s4735_s6] sm:$0xff] }
 0x1d7   : > { %v2133_v63 = vadd.f32 %v2097_v27, %v2020_v53  ;;  %v1543_v32 = vadd.f32 %v4592_v34, %v1430_v37  ;;  %v1811_v46 = vmul.f32 %v4570_v14, %v4598_v51  ;;  %v1812_v13 = vmul.f32 %v4570_v14, %v4606_v30  ;;  %v2075_v30 = vld [vmem:[#allocation2 + $0x136] sm:$0xff]  ;;  %v2528_v53 = vld [vmem:[%s379_s20] sm:$0xff] }
 0x1d8   : > { %v1621_v2 = vadd.f32 %v1585_v7, %v1542_v20  ;;  %v2175_v28 = vadd.f32 %v4328_v29, %v2132_v55  ;;  %v2193_v0 = vadd.f32 %v4328_v29, %v2150_v52  ;;  %v2194_v34 = vadd.f32 %v4328_v29, %v2151_v8  ;;  %v2529_v52 = vld [vmem:[%s379_s20 + $0x8] sm:$0xff]  ;;  %v2530_v55 = vld [vmem:[%s379_s20 + $0x10] sm:$0xff]  ;;  %s3115_s20 = sshll.u32 %s3195_s16, 4  ;;  %s3116_s20 = int_to_ptr.vmem [resolvable:$false] %s3115_s20 }
 0x1d9   : > { %v2176_v4 = vadd.f32 %v4328_v29, %v2133_v63  ;;  %v1622_v60 = vadd.f32 %v1586_v48, %v1543_v32  ;;  %v1890_v54 = vmul.f32 %v4547_v12, %v1849_v9  ;;  %v1891_v42 = vmul.f32 %v4547_v12, %v1850_v21  ;;  %s3117_s18 = scalar_lea.vmem %s3116_s20, 768  ;;  %p3118_p1 = scmp.lt.s32.totalorder %s4683_s24, %s3116_s20 }
 0x1da   : > { %v1734_v36 = vadd.f32 %v1698_v24, %v1621_v2  ;;  %v2211_v11 = vmax.f32 %v2175_v28, 0.0  ;;  %v2003_v38 = vmul.f32 %v4562_v58, %v1962_v25  ;;  %v2229_v45 = vmax.f32 %v2193_v0, 0.0  ;;  %p3119_p2 = scmp.lt.s32.totalorder %s3117_s18, %s3111_s12 }
 0x1db   : > { %v2212_v15 = vmax.f32 %v2176_v4, 0.0  ;;  %v1735_v51 = vadd.f32 %v1699_v26, %v1622_v60  ;;  %v2230_v62 = vmax.f32 %v2194_v34, 0.0  ;;  %v2004_v31 = vmul.f32 %v4562_v58, %v1963_v49 }
 0x1dc   : > { %v1847_v40 = vadd.f32 %v1811_v46, %v1734_v36  ;;  %v2247_v33 = vmin.f32 %v2211_v11, 6.0  ;;  %v2116_v41 = vmul.f32 %v4577_v22, %v2075_v30  ;;  %v2117_v19 = vmul.f32 %v4577_v22, %v2076_v56  ;;  %p3120_p3 = por %p3119_p2, %p3118_p1 }
 0x1dd   : > { %v2248_v17 = vmin.f32 %v2212_v15, 6.0  ;;  %v1848_v14 = vadd.f32 %v1812_v13, %v1735_v51  ;;  %v3194_v5 = vmov 0.0|0.0   ;;  %v2265_v59 = vmin.f32 %v2229_v45, 6.0 }
 0x1de   : > { %v1926_v35 = vadd.f32 %v1890_v54, %v1847_v40  ;;  %v2266_v10 = vmin.f32 %v2230_v62, 6.0  ;;  %v4791_v27 = vmov 0.0   ;;  %p3121_p5 = pnand %p3120_p3, %p3114_p0 }
 0x1df   : > { %v3008_v61 = vpack.c.bf16 %v2248_v17, %v2247_v33  ;;  %v1927_v57 = vadd.f32 %v1891_v42, %v1848_v14 }
 0x1e0   : > { %v2039_v47 = vadd.f32 %v2003_v38, %v1926_v35  ;;  %v3012_v1 = vpack.c.bf16 %v2266_v10, %v2265_v59 }
 0x1e1   : > { %3010 = vmatpush3.bf16.xpose.msk.msra.mxu1 %vm4174_vm4, %v3008_v61  ;;  %v2040_v12 = vadd.f32 %v2004_v31, %v1927_v57 }
 0x1e2   : > { %3011 = vmatprep.subr.bf16.mxu1 %v3194_v5  ;;  %v2152_v16 = vadd.f32 %v2116_v41, %v2039_v47 }
 0x1e3   : > { %v2153_v44 = vadd.f32 %v2117_v19, %v2040_v12 }
 0x1e4   : > { %v2195_v6 = vadd.f32 %v4328_v29, %v2152_v16 }
 0x1e5   : > { %v2196_v58 = vadd.f32 %v4328_v29, %v2153_v44  ;;  %v2274_v29 = vpop.permute.xlu1 %2273 }
 0x1e6   : > { %v2231_v22 = vmax.f32 %v2195_v6, 0.0 }
 0x1e7   : > { %v2232_v3 = vmax.f32 %v2196_v58, 0.0 }
 0x1e8   : > { %2821 = vmatmul.mubr.msk.f32.vlgmr.msra.gmra.mrb[36].mxu1 %vm1197_vm2, %v3110_v43  ;;  %v2267_v7 = vmin.f32 %v2231_v22, 6.0 }
 0x1e9   : > { %3014 = vmatpush3.bf16.xpose.msk.msra.mxu1 %vm4174_vm4, %v3012_v1  ;;  %2960 = vmatprep.mubr.msk.f32.mxu1 %vm3192_vm0, %v4791_v27  ;;  %v2268_v50 = vmin.f32 %v2232_v3, 6.0 }
 0x1ea   : > { %3015 = vmatprep.subr.bf16.mxu1 %v3194_v5 }
 0x1eb   : > { %v3016_v39 = vpack.c.bf16 %v2268_v50, %v2267_v7 }
 0x1f1   : > { %3018 = vmatpush3.bf16.xpose.msk.msra.mxu1 %vm4174_vm4, %v3016_v39 }
 0x1f8   : > { %2961 = vmatmul.mubr.msk.f32.vlgmr.msra.gmra.mrb[38].mxu1 %vm1197_vm2, %v3110_v43 }
 0x2bb   : > { %v2453_v23 = vpop.f32.mrb[36].mxu1 }
 0x2bc   : > { %v2454_v37 = vadd.f32 %v2453_v23, %v2274_v29  ;;  %v2455_v48 = vpop.f32.mrb[37].mxu1 }
 0x2bd   : > { %v2456_v8 = vadd.f32 %v2455_v48, %v2274_v29 }
 0x2be   : > { %v2531_v20 = vadd.f32 %v2528_v53, %v2454_v37 }
 0x2bf   : > { %v2532_v18 = vadd.f32 %v2529_v52, %v2456_v8 }
 0x2c0   : > { %2534 = vst [vmem:[%s365_s23] sm:$0xff] %v2531_v20 }
 0x2c1   : > { %2535 = vst [vmem:[%s365_s23 + $0x8] sm:$0xff] %v2532_v18 }
 0x2cb   : > { %v2524_v24 = vpop.f32.mrb[38].mxu1 }
 0x2cc   : > { %v2525_v63 = vadd.f32 %v2524_v24, %v2274_v29  ;;  %v2962_v32 = vpop.f32.mrb[39].mxu1 }
 0x2ce   : > { %v2533_v26 = vadd.f32 %v2530_v55, %v2525_v63 }
 0x2d0   : > { %2536 = vst.msk [vmem:[%s365_s23 + $0x10] sm:$0xff] %vm1197_vm2, %v2533_v26 }
 0x2d1   : > { %3124 = shalt.err (!%p3121_p5)
}
 0x2d2   : > { %s3125_s29 = scalar_lea.hbm %s4681_s28, 384  ;;  %s3129_s26 = scalar_lea.hbm %s4738_s9, 768 }
 0x2d3   : > { %p3126_p6 = scmp.ne.s32.totalorder %s4681_s28, %s3125_s29  ;;  %p3130_p10 = scmp.lt.u32.totalorder %s4681_s28, %s4738_s9 }
 0x2d4   : > { %p3131_p11 = scmp.lt.u32.totalorder %s3129_s26, %s3125_s29  ;;  %p3133_p13 = scmp.lt.u32.totalorder %s3125_s29, %s4681_s28 }
 0x2d5   : > { %p3127_p7 = pnand %p3126_p6, %p3286_p4 }
 0x2d6   : > { %p3132_p12 = por %p3131_p11, %p3130_p10 }
 0x2d7   : > { %p3128_p9 = pneg %p3127_p7 }
 0x2d8   : > { %p3134_p0 = por %p3133_p13, %p3132_p12 }
 0x2da   : > { %p3135_p1 = pnand %p3134_p0, %p3128_p9 }
 0x2dc   : > { %3138 = shalt.err (!%p3135_p1)
}
 0x2dd   : > { %3025 = dma.vmem_to_hbm [thread:$0]  (%p3286_p4), %s4683_s24, 384, %s4681_s28, %s2538_s15  }
 0x2de PF: > { %p3031_p2 = scmp.ge.s32.totalorder %s3189_s14, 2  ;;  %s2566_s12 = sand.u32 1, %s3169_s30  }
 0x2df   : > { %s2567_s20 = scalar_lea.sflag [#allocation4], %s2566_s12 }
 0x2e0   : > { %p3028_p3 = pnand %p3031_p2, %p3293_p8 }
 0x2e2   : > { %3164 = dma.done.wait (!%p3028_p3), %s2567_s20, 384  }
 0x2e3   : > { %3166 = vsyncadd (!%p3028_p3), %s2567_s20, 4294966912  ;;  %s22_s14 = sadd.s32 1, %s3189_s14   ;;  %s4792_s30 = smov %s3173_s10 }
 0x2e4   : > { %p19_p5 = scmp.ge.s32.totalorder %s22_s14, 4   ;;  %s4793_s10 = smov %s3177_s11 }
 0x2e5   : > { %s4794_s11 = smov %s3299_s22  ;;  %s4795_s12 = smov %s3185_s13 }
 0x2e6   : > { %s4796_s13 = smov %s4798_s17  ;;  %21 = sbr.rel (!%p19_p5) target bundleno = 4 (0x4), region = 96 }
 0x2ed   :  { %2572 = vsyncpa [#allocation4], 1 }
 0x2ee   :  { %2574 = vsyncpa [#allocation4 + $0x1], 1 }

</bundles_post_ra>
